<compile_context>
chip_gen: v5e
topology: v5e:2x2
jax: 0.10.0
libtpu: 0.0.40
codegen_flags: <defaults>
</compile_context>

<pallas_src>
import functools
import math

import jax
import jax.numpy as jnp
from jax import lax
from jax.experimental import pallas as pl
from jax.experimental.pallas import tpu as pltpu


# (out_channels, kernel, stride) for the three conv layers of the module.
CONV_DEFS = ((32, 8, 4), (64, 4, 2), (64, 3, 1))


def _conv_geom(in_ch, H, W):
    """Static geometry of the three conv layers (mirrors the torch dummy pass)."""
    geoms = []
    C, h, w = in_ch, H, W
    for (oc, k, s) in CONV_DEFS:
        ho = (h - k) // s + 1
        wo = (w - k) // s + 1
        geoms.append(dict(C=C, H=h, W=w, OC=oc, k=k, s=s, Ho=ho, Wo=wo))
        C, h, w = oc, ho, wo
    return geoms


# ----------------------------- fused Pallas kernel ---------------------------
def _make_fused_kernel(g1, g2, g3):
    """Builds the per-sample fused forward kernel (closed over static geometry)."""

    def kernel(p1_ref, w1_ref, b1_ref, w2_ref, b2_ref, w3_ref, b3_ref,
               wf1_ref, bf1_ref, wf2_ref, bf2_ref, o_ref,
               act2_ref, p2_ref, act3_ref, p3_ref, fcin_ref):

        def dense(a, w_ref, b_ref, relu):
            # bf16 x bf16 MXU matmul, f32 accumulation, f32 bias.
            acc = jnp.dot(a.astype(jnp.bfloat16), w_ref[...],
                          preferred_element_type=jnp.float32)
            acc = acc + b_ref[...]
            if relu:
                acc = jnp.maximum(acc, 0.0)
            return acc

        def scatter_to_image(out_vals, act_ref, g):
            # out_vals rows ordered (ow, oh); act image: rows=h, lanes=(w, c).
            Ho, Wo, OC = g["Ho"], g["Wo"], g["OC"]
            for ow in range(Wo):
                act_ref[0:Ho, ow * OC:(ow + 1) * OC] = \
                    out_vals[ow * Ho:(ow + 1) * Ho, :]

        def im2col(act_ref, p_ref, g):
            # act: rows=h, lanes=(w, c)   ->   patches: rows=(ow, oh),
            # lanes=(ki, kj, c). Only contiguous sub-tile loads/stores.
            C, k, s, Ho, Wo = g["C"], g["k"], g["s"], g["Ho"], g["Wo"]
            for ki in range(k):
                for ow in range(Wo):
                    for oh in range(Ho):
                        r = oh * s + ki
                        p_ref[ow * Ho + oh: ow * Ho + oh + 1,
                              ki * k * C:(ki + 1) * k * C] = \
                            act_ref[r:r + 1, (ow * s) * C:(ow * s + k) * C]

        # ---- conv1: patches precomputed on host, matmul + bias + relu here ----
        out1 = dense(p1_ref[...], w1_ref, b1_ref, True)      # (Wo1*Ho1, 32)
        scatter_to_image(out1, act2_ref, g1)                  # -> (H2, W2*C2)

        # ---- conv2 (fully in-kernel) ----
        im2col(act2_ref, p2_ref, g2)
        out2 = dense(p2_ref[...], w2_ref, b2_ref, True)       # (Ho2*Wo2, 64)
        scatter_to_image(out2, act3_ref, g2)                  # -> (H3, W3*C3)

        # ---- conv3 (fully in-kernel) ----
        im2col(act3_ref, p3_ref, g3)
        out3 = dense(p3_ref[...], w3_ref, b3_ref, True)       # (Ho3*Wo3, 64)

        # ---- flatten conv output into one FC row, feature order (w, h, c) ----
        n_pix = g3["Ho"] * g3["Wo"]
        OC3 = g3["OC"]
        for r in range(n_pix):
            fcin_ref[0:1, r * OC3:(r + 1) * OC3] = out3[r:r + 1, :]

        # ---- FC head ----
        h = dense(fcin_ref[...], wf1_ref, bf1_ref, True)      # (1, hidden)
        o_ref[...] = dense(h, wf2_ref, bf2_ref, False)        # (1, num_actions)

    return kernel


# ----------------------------- host-side glue --------------------------------
def _conv1_im2col(x_nchw, k, s):
    """im2col of the raw input for conv1.

    Row order per sample is (ow, oh); feature order is (ki, kj, c), matching
    the prepared conv1 weight layout. This is input-only preprocessing that
    XLA fuses with the surrounding jit (no inter-layer HBM round trips).
    """
    N, C, H, W = x_nchw.shape
    Ho = (H - k) // s + 1
    Wo = (W - k) // s + 1
    x = jnp.transpose(x_nchw, (0, 2, 3, 1))                       # NHWC
    rows = []
    for ki in range(k):
        cols = []
        for kj in range(k):
            cols.append(x[:, ki:ki + s * Ho:s, kj:kj + s * Wo:s, :])  # (N,Ho,Wo,C)
        rows.append(jnp.stack(cols, axis=3))                      # (N,Ho,Wo,kj,C)
    pat = jnp.stack(rows, axis=3)                                 # (N,Ho,Wo,ki,kj,C)
    pat = jnp.transpose(pat, (0, 2, 1, 3, 4, 5))                  # (N,Wo,Ho,ki,kj,C)
    return pat.reshape(N, Wo * Ho, k * k * C)


def deep_q_forward(prepared, x):
    """x: (N, C*history, H, W) NCHW float32 -> (N, num_actions) float32."""
    N, C, H, W = x.shape
    g1, g2, g3 = _conv_geom(C, H, W)
    A = prepared["bf2"].shape[-1]

    p1 = _conv1_im2col(x, g1["k"], g1["s"]).astype(jnp.bfloat16)  # (N, M1, K1)
    M1, K1 = p1.shape[1], p1.shape[2]

    kernel = _make_fused_kernel(g1, g2, g3)

    weight_args = (prepared["w1"], prepared["b1"],
                   prepared["w2"], prepared["b2"],
                   prepared["w3"], prepared["b3"],
                   prepared["wf1"], prepared["bf1"],
                   prepared["wf2"], prepared["bf2"])

    in_specs = [pl.BlockSpec((None, M1, K1), lambda i: (i, 0, 0))]
    # Whole weights / biases resident in VMEM, same block every grid step.
    in_specs += [pl.BlockSpec(a.shape, lambda i: (0, 0)) for a in weight_args]

    out = pl.pallas_call(
        kernel,
        out_shape=jax.ShapeDtypeStruct((N, 1, A), jnp.float32),
        grid=(N,),                                   # one grid step per sample
        in_specs=in_specs,
        out_specs=pl.BlockSpec((None, 1, A), lambda i: (i, 0, 0)),
        scratch_shapes=[
            pltpu.VMEM((g2["H"], g2["W"] * g2["C"]), jnp.float32),                # act2
            pltpu.VMEM((g2["Ho"] * g2["Wo"], g2["k"] * g2["k"] * g2["C"]),
                       jnp.float32),                                              # P2
            pltpu.VMEM((g3["H"], g3["W"] * g3["C"]), jnp.float32),                # act3
            pltpu.VMEM((g3["Ho"] * g3["Wo"], g3["k"] * g3["k"] * g3["C"]),
                       jnp.float32),                                              # P3
            pltpu.VMEM((1, g3["Ho"] * g3["Wo"] * g3["OC"]), jnp.float32),         # fc in
        ],
        compiler_params=pltpu.CompilerParams(
            dimension_semantics=("parallel",)),      # lets v7x use both TCs
    )(p1, *weight_args)
    return out.reshape(N, A)


# ----------------------------- parameter handling -----------------------------
def _xavier_uniform(key, shape, fan_in, fan_out):
    bound = math.sqrt(6.0 / (fan_in + fan_out))
    return jax.random.uniform(key, shape, jnp.float32, -bound, bound)


def init_params(key, in_ch, num_actions, hidden_dim, cnn_out_dim):
    """PyTorch-layout parameters (OIHW convs, (out,in) linears), xavier weights."""
    keys = jax.random.split(key, 10)
    p = {}
    p["w1"] = _xavier_uniform(keys[0], (32, in_ch, 8, 8), in_ch * 64, 32 * 64)
    p["b1"] = jax.random.uniform(keys[1], (32,), jnp.float32,
                                 -1.0 / math.sqrt(in_ch * 64), 1.0 / math.sqrt(in_ch * 64))
    p["w2"] = _xavier_uniform(keys[2], (64, 32, 4, 4), 32 * 16, 64 * 16)
    p["b2"] = jax.random.uniform(keys[3], (64,), jnp.float32,
                                 -1.0 / math.sqrt(32 * 16), 1.0 / math.sqrt(32 * 16))
    p["w3"] = _xavier_uniform(keys[4], (64, 64, 3, 3), 64 * 9, 64 * 9)
    p["b3"] = jax.random.uniform(keys[5], (64,), jnp.float32,
                                 -1.0 / math.sqrt(64 * 9), 1.0 / math.sqrt(64 * 9))
    p["wf1"] = _xavier_uniform(keys[6], (hidden_dim, cnn_out_dim), cnn_out_dim, hidden_dim)
    p["bf1"] = jax.random.uniform(keys[7], (hidden_dim,), jnp.float32,
                                  -1.0 / math.sqrt(cnn_out_dim), 1.0 / math.sqrt(cnn_out_dim))
    p["wf2"] = _xavier_uniform(keys[8], (num_actions, hidden_dim), hidden_dim, num_actions)
    p["bf2"] = jax.random.uniform(keys[9], (num_actions,), jnp.float32,
                                  -1.0 / math.sqrt(hidden_dim), 1.0 / math.sqrt(hidden_dim))
    return p


def prepare_params(p, g3):
    """One-time reorder / transpose / cast of PyTorch-layout params for the kernel."""
    def conv_w(w):  # OIHW (OC, C, kh, kw) -> (kh*kw*C, OC) bf16
        oc, c, kh, kw = w.shape
        return jnp.transpose(w, (2, 3, 1, 0)).reshape(kh * kw * c, oc).astype(jnp.bfloat16)

    hidden = p["wf1"].shape[0]
    oc3, h3, w3 = g3["OC"], g3["Ho"], g3["Wo"]
    # fc1 columns: torch NCHW-flatten (c, h, w)  ->  kernel's (w, h, c) order.
    wf1 = p["wf1"].reshape(hidden, oc3, h3, w3).transpose(0, 3, 2, 1).reshape(hidden, -1)

    return {
        "w1": conv_w(p["w1"]), "b1": p["b1"].reshape(1, -1).astype(jnp.float32),
        "w2": conv_w(p["w2"]), "b2": p["b2"].reshape(1, -1).astype(jnp.float32),
        "w3": conv_w(p["w3"]), "b3": p["b3"].reshape(1, -1).astype(jnp.float32),
        "wf1": jnp.transpose(wf1).astype(jnp.bfloat16),
        "bf1": p["bf1"].reshape(1, -1).astype(jnp.float32),
        "wf2": jnp.transpose(p["wf2"]).astype(jnp.bfloat16),
        "bf2": p["bf2"].reshape(1, -1).astype(jnp.float32),
    }


# ----------------------------- pure-JAX reference -----------------------------
def _reference_forward(p, x):
    def conv(x, w, b, s):
        y = lax.conv_general_dilated(x, w, (s, s), "VALID",
                                     dimension_numbers=("NCHW", "OIHW", "NCHW"))
        return jax.nn.relu(y + b.reshape(1, -1, 1, 1))
    x = conv(x, p["w1"], p["b1"], 4)
    x = conv(x, p["w2"], p["b2"], 2)
    x = conv(x, p["w3"], p["b3"], 1)
    x = x.reshape(x.shape[0], -1)
    x = jax.nn.relu(x @ p["wf1"].T + p["bf1"])
    return x @ p["wf2"].T + p["bf2"]


# ----------------------------- main -------------------------------------------
if __name__ == "__main__":
    # Small config: in_dim=(1, 36, 36), history_length=4 -> 4 input channels.
    # Conv stack: 36 -> 8 -> 3 -> 1 spatial, so cnn_out_dim = 64.
    batch = 2
    in_ch = 4                 # in_dim[0] * history_length
    H = W = 36
    num_actions = 6
    hidden_dim = 512          # module default

    g1, g2, g3 = _conv_geom(in_ch, H, W)
    cnn_out_dim = g3["OC"] * g3["Ho"] * g3["Wo"]

    key = jax.random.PRNGKey(0)
    k_params, k_x = jax.random.split(key)
    params = init_params(k_params, in_ch, num_actions, hidden_dim, cnn_out_dim)
    prepared = prepare_params(params, g3)
    x = jax.random.normal(k_x, (batch, in_ch, H, W), jnp.float32)

    fwd = jax.jit(deep_q_forward)
    out = jax.block_until_ready(fwd(prepared, x))
    assert out.shape == (batch, num_actions), out.shape
    assert bool(jnp.all(jnp.isfinite(out)))

    # Loose correctness check vs. an f32 pure-JAX reference (kernel uses bf16 MXU).
    ref = _reference_forward(params, x)
    err = float(jnp.max(jnp.abs(out - ref)))
    scale = float(jnp.max(jnp.abs(ref))) + 1e-6
    assert err <= 0.1 * scale + 1e-2, (err, scale)

    print("KERNEL_OK")
</pallas_src>

<mosaic_0001>
module attributes {stable_mosaic.version = 11 : i64} {
  func.func @kernel(%arg0: i32, %arg1: memref<1x64x256xbf16, #tpu.memory_space<vmem>>, %arg2: memref<256x32xbf16, #tpu.memory_space<vmem>>, %arg3: memref<1x32xf32, #tpu.memory_space<vmem>>, %arg4: memref<512x64xbf16, #tpu.memory_space<vmem>>, %arg5: memref<1x64xf32, #tpu.memory_space<vmem>>, %arg6: memref<576x64xbf16, #tpu.memory_space<vmem>>, %arg7: memref<1x64xf32, #tpu.memory_space<vmem>>, %arg8: memref<64x512xbf16, #tpu.memory_space<vmem>>, %arg9: memref<1x512xf32, #tpu.memory_space<vmem>>, %arg10: memref<512x6xbf16, #tpu.memory_space<vmem>>, %arg11: memref<1x6xf32, #tpu.memory_space<vmem>>, %arg12: memref<1x1x6xf32, #tpu.memory_space<vmem>>, %arg13: memref<8x256xf32, #tpu.memory_space<vmem>>, %arg14: memref<9x512xf32, #tpu.memory_space<vmem>>, %arg15: memref<3x192xf32, #tpu.memory_space<vmem>>, %arg16: memref<1x576xf32, #tpu.memory_space<vmem>>, %arg17: memref<1x64xf32, #tpu.memory_space<vmem>>) attributes {dimension_semantics = [#tpu.dimension_semantics<parallel>], iteration_bounds = array<i64: 2>, scalar_prefetch = 0 : i64, scratch_operands = 5 : i64, tpu.core_type = #tpu.core_type<tc>, window_params = [{transform_indices = @transform_0, window_bounds = array<i64: 1, 64, 256>}, {pipeline_mode = #tpu.pipeline_mode<synchronous>, transform_indices = @transform_1, window_bounds = array<i64: 256, 32>}, {pipeline_mode = #tpu.pipeline_mode<synchronous>, transform_indices = @transform_2, window_bounds = array<i64: 1, 32>}, {pipeline_mode = #tpu.pipeline_mode<synchronous>, transform_indices = @transform_3, window_bounds = array<i64: 512, 64>}, {pipeline_mode = #tpu.pipeline_mode<synchronous>, transform_indices = @transform_4, window_bounds = array<i64: 1, 64>}, {pipeline_mode = #tpu.pipeline_mode<synchronous>, transform_indices = @transform_5, window_bounds = array<i64: 576, 64>}, {pipeline_mode = #tpu.pipeline_mode<synchronous>, transform_indices = @transform_6, window_bounds = array<i64: 1, 64>}, {pipeline_mode = #tpu.pipeline_mode<synchronous>, transform_indices = @transform_7, window_bounds = array<i64: 64, 512>}, {pipeline_mode = #tpu.pipeline_mode<synchronous>, transform_indices = @transform_8, window_bounds = array<i64: 1, 512>}, {pipeline_mode = #tpu.pipeline_mode<synchronous>, transform_indices = @transform_9, window_bounds = array<i64: 512, 6>}, {pipeline_mode = #tpu.pipeline_mode<synchronous>, transform_indices = @transform_10, window_bounds = array<i64: 1, 6>}, {transform_indices = @transform_11, window_bounds = array<i64: 1, 1, 6>}]} {
    %c0 = arith.constant 0 : index
    %c0_0 = arith.constant 0 : index
    %c0_1 = arith.constant 0 : index
    %0 = vector.load %arg1[%c0, %c0_0, %c0_1] : memref<1x64x256xbf16, #tpu.memory_space<vmem>>, vector<1x64x256xbf16>
    %1 = vector.shape_cast %0 : vector<1x64x256xbf16> to vector<64x256xbf16>
    %c0_2 = arith.constant 0 : index
    %c0_3 = arith.constant 0 : index
    %2 = vector.load %arg2[%c0_2, %c0_3] : memref<256x32xbf16, #tpu.memory_space<vmem>>, vector<256x32xbf16>
    %cst = arith.constant dense<0.000000e+00> : vector<64x32xf32>
    %3 = tpu.matmul %1, %2, %cst {dimension_numbers = #tpu.dot_dimension_numbers<[1], [0], [0], [1], [0, 0, 1, 1], [], []>} : vector<64x256xbf16>, vector<256x32xbf16>, vector<64x32xf32> -> vector<64x32xf32>
    %c0_4 = arith.constant 0 : index
    %c0_5 = arith.constant 0 : index
    %4 = vector.load %arg3[%c0_4, %c0_5] : memref<1x32xf32, #tpu.memory_space<vmem>>, vector<1x32xf32>
    %5 = vector.broadcast %4 : vector<1x32xf32> to vector<64x32xf32>
    %6 = arith.addf %3, %5 : vector<64x32xf32>
    %cst_6 = arith.constant 0.000000e+00 : f32
    %7 = vector.broadcast %cst_6 : f32 to vector<64x32xf32>
    %8 = arith.maximumf %6, %7 : vector<64x32xf32>
    %9 = vector.extract_strided_slice %8 {offsets = [0, 0], sizes = [8, 32], strides = [1, 1]} : vector<64x32xf32> to vector<8x32xf32>
    %c0_7 = arith.constant 0 : index
    %c0_8 = arith.constant 0 : index
    %10 = vector.load %arg13[%c0_7, %c0_8] : memref<8x256xf32, #tpu.memory_space<vmem>>, vector<8x32xf32>
    tpu.vector_store %arg13[%c0_7, %c0_8], %9 {strides = array<i32>} : memref<8x256xf32, #tpu.memory_space<vmem>>, vector<8x32xf32>,
    %11 = vector.extract_strided_slice %8 {offsets = [8, 0], sizes = [8, 32], strides = [1, 1]} : vector<64x32xf32> to vector<8x32xf32>
    %c0_9 = arith.constant 0 : index
    %c32 = arith.constant 32 : index
    %12 = vector.load %arg13[%c0_9, %c32] : memref<8x256xf32, #tpu.memory_space<vmem>>, vector<8x32xf32>
    tpu.vector_store %arg13[%c0_9, %c32], %11 {strides = array<i32>} : memref<8x256xf32, #tpu.memory_space<vmem>>, vector<8x32xf32>,
    %13 = vector.extract_strided_slice %8 {offsets = [16, 0], sizes = [8, 32], strides = [1, 1]} : vector<64x32xf32> to vector<8x32xf32>
    %c0_10 = arith.constant 0 : index
    %c64 = arith.constant 64 : index
    %14 = vector.load %arg13[%c0_10, %c64] : memref<8x256xf32, #tpu.memory_space<vmem>>, vector<8x32xf32>
    tpu.vector_store %arg13[%c0_10, %c64], %13 {strides = array<i32>} : memref<8x256xf32, #tpu.memory_space<vmem>>, vector<8x32xf32>,
    %15 = vector.extract_strided_slice %8 {offsets = [24, 0], sizes = [8, 32], strides = [1, 1]} : vector<64x32xf32> to vector<8x32xf32>
    %c0_11 = arith.constant 0 : index
    %c96 = arith.constant 96 : index
    %16 = vector.load %arg13[%c0_11, %c96] : memref<8x256xf32, #tpu.memory_space<vmem>>, vector<8x32xf32>
    tpu.vector_store %arg13[%c0_11, %c96], %15 {strides = array<i32>} : memref<8x256xf32, #tpu.memory_space<vmem>>, vector<8x32xf32>,
    %17 = vector.extract_strided_slice %8 {offsets = [32, 0], sizes = [8, 32], strides = [1, 1]} : vector<64x32xf32> to vector<8x32xf32>
    %c0_12 = arith.constant 0 : index
    %c128 = arith.constant 128 : index
    %18 = vector.load %arg13[%c0_12, %c128] : memref<8x256xf32, #tpu.memory_space<vmem>>, vector<8x32xf32>
    tpu.vector_store %arg13[%c0_12, %c128], %17 {strides = array<i32>} : memref<8x256xf32, #tpu.memory_space<vmem>>, vector<8x32xf32>,
    %19 = vector.extract_strided_slice %8 {offsets = [40, 0], sizes = [8, 32], strides = [1, 1]} : vector<64x32xf32> to vector<8x32xf32>
    %c0_13 = arith.constant 0 : index
    %c160 = arith.constant 160 : index
    %20 = vector.load %arg13[%c0_13, %c160] : memref<8x256xf32, #tpu.memory_space<vmem>>, vector<8x32xf32>
    tpu.vector_store %arg13[%c0_13, %c160], %19 {strides = array<i32>} : memref<8x256xf32, #tpu.memory_space<vmem>>, vector<8x32xf32>,
    %21 = vector.extract_strided_slice %8 {offsets = [48, 0], sizes = [8, 32], strides = [1, 1]} : vector<64x32xf32> to vector<8x32xf32>
    %c0_14 = arith.constant 0 : index
    %c192 = arith.constant 192 : index
    %22 = vector.load %arg13[%c0_14, %c192] : memref<8x256xf32, #tpu.memory_space<vmem>>, vector<8x32xf32>
    tpu.vector_store %arg13[%c0_14, %c192], %21 {strides = array<i32>} : memref<8x256xf32, #tpu.memory_space<vmem>>, vector<8x32xf32>,
    %23 = vector.extract_strided_slice %8 {offsets = [56, 0], sizes = [8, 32], strides = [1, 1]} : vector<64x32xf32> to vector<8x32xf32>
    %c0_15 = arith.constant 0 : index
    %c224 = arith.constant 224 : index
    %24 = vector.load %arg13[%c0_15, %c224] : memref<8x256xf32, #tpu.memory_space<vmem>>, vector<8x32xf32>
    tpu.vector_store %arg13[%c0_15, %c224], %23 {strides = array<i32>} : memref<8x256xf32, #tpu.memory_space<vmem>>, vector<8x32xf32>,
    %c0_16 = arith.constant 0 : index
    %c0_17 = arith.constant 0 : index
    %25 = vector.load %arg13[%c0_16, %c0_17] : memref<8x256xf32, #tpu.memory_space<vmem>>, vector<1x128xf32>
    %c0_18 = arith.constant 0 : index
    %c0_19 = arith.constant 0 : index
    %26 = vector.load %arg14[%c0_18, %c0_19] : memref<9x512xf32, #tpu.memory_space<vmem>>, vector<1x128xf32>
    tpu.vector_store %arg14[%c0_18, %c0_19], %25 {strides = array<i32>} : memref<9x512xf32, #tpu.memory_space<vmem>>, vector<1x128xf32>,
    %c2 = arith.constant 2 : index
    %c0_20 = arith.constant 0 : index
    %27 = vector.load %arg13[%c2, %c0_20] : memref<8x256xf32, #tpu.memory_space<vmem>>, vector<1x128xf32>
    %c1 = arith.constant 1 : index
    %c0_21 = arith.constant 0 : index
    %28 = vector.load %arg14[%c1, %c0_21] : memref<9x512xf32, #tpu.memory_space<vmem>>, vector<1x128xf32>
    tpu.vector_store %arg14[%c1, %c0_21], %27 {strides = array<i32>} : memref<9x512xf32, #tpu.memory_space<vmem>>, vector<1x128xf32>,
    %c4 = arith.constant 4 : index
    %c0_22 = arith.constant 0 : index
    %29 = vector.load %arg13[%c4, %c0_22] : memref<8x256xf32, #tpu.memory_space<vmem>>, vector<1x128xf32>
    %c2_23 = arith.constant 2 : index
    %c0_24 = arith.constant 0 : index
    %30 = vector.load %arg14[%c2_23, %c0_24] : memref<9x512xf32, #tpu.memory_space<vmem>>, vector<1x128xf32>
    tpu.vector_store %arg14[%c2_23, %c0_24], %29 {strides = array<i32>} : memref<9x512xf32, #tpu.memory_space<vmem>>, vector<1x128xf32>,
    %c0_25 = arith.constant 0 : index
    %c64_26 = arith.constant 64 : index
    %31 = vector.load %arg13[%c0_25, %c64_26] : memref<8x256xf32, #tpu.memory_space<vmem>>, vector<1x128xf32>
    %c3 = arith.constant 3 : index
    %c0_27 = arith.constant 0 : index
    %32 = vector.load %arg14[%c3, %c0_27] : memref<9x512xf32, #tpu.memory_space<vmem>>, vector<1x128xf32>
    tpu.vector_store %arg14[%c3, %c0_27], %31 {strides = array<i32>} : memref<9x512xf32, #tpu.memory_space<vmem>>, vector<1x128xf32>,
    %c2_28 = arith.constant 2 : index
    %c64_29 = arith.constant 64 : index
    %33 = vector.load %arg13[%c2_28, %c64_29] : memref<8x256xf32, #tpu.memory_space<vmem>>, vector<1x128xf32>
    %c4_30 = arith.constant 4 : index
    %c0_31 = arith.constant 0 : index
    %34 = vector.load %arg14[%c4_30, %c0_31] : memref<9x512xf32, #tpu.memory_space<vmem>>, vector<1x128xf32>
    tpu.vector_store %arg14[%c4_30, %c0_31], %33 {strides = array<i32>} : memref<9x512xf32, #tpu.memory_space<vmem>>, vector<1x128xf32>,
    %c4_32 = arith.constant 4 : index
    %c64_33 = arith.constant 64 : index
    %35 = vector.load %arg13[%c4_32, %c64_33] : memref<8x256xf32, #tpu.memory_space<vmem>>, vector<1x128xf32>
    %c5 = arith.constant 5 : index
    %c0_34 = arith.constant 0 : index
    %36 = vector.load %arg14[%c5, %c0_34] : memref<9x512xf32, #tpu.memory_space<vmem>>, vector<1x128xf32>
    tpu.vector_store %arg14[%c5, %c0_34], %35 {strides = array<i32>} : memref<9x512xf32, #tpu.memory_space<vmem>>, vector<1x128xf32>,
    %c0_35 = arith.constant 0 : index
    %c128_36 = arith.constant 128 : index
    %37 = vector.load %arg13[%c0_35, %c128_36] : memref<8x256xf32, #tpu.memory_space<vmem>>, vector<1x128xf32>
    %c6 = arith.constant 6 : index
    %c0_37 = arith.constant 0 : index
    %38 = vector.load %arg14[%c6, %c0_37] : memref<9x512xf32, #tpu.memory_space<vmem>>, vector<1x128xf32>
    tpu.vector_store %arg14[%c6, %c0_37], %37 {strides = array<i32>} : memref<9x512xf32, #tpu.memory_space<vmem>>, vector<1x128xf32>,
    %c2_38 = arith.constant 2 : index
    %c128_39 = arith.constant 128 : index
    %39 = vector.load %arg13[%c2_38, %c128_39] : memref<8x256xf32, #tpu.memory_space<vmem>>, vector<1x128xf32>
    %c7 = arith.constant 7 : index
    %c0_40 = arith.constant 0 : index
    %40 = vector.load %arg14[%c7, %c0_40] : memref<9x512xf32, #tpu.memory_space<vmem>>, vector<1x128xf32>
    tpu.vector_store %arg14[%c7, %c0_40], %39 {strides = array<i32>} : memref<9x512xf32, #tpu.memory_space<vmem>>, vector<1x128xf32>,
    %c4_41 = arith.constant 4 : index
    %c128_42 = arith.constant 128 : index
    %41 = vector.load %arg13[%c4_41, %c128_42] : memref<8x256xf32, #tpu.memory_space<vmem>>, vector<1x128xf32>
    %c8 = arith.constant 8 : index
    %c0_43 = arith.constant 0 : index
    %42 = vector.load %arg14[%c8, %c0_43] : memref<9x512xf32, #tpu.memory_space<vmem>>, vector<1x128xf32>
    tpu.vector_store %arg14[%c8, %c0_43], %41 {strides = array<i32>} : memref<9x512xf32, #tpu.memory_space<vmem>>, vector<1x128xf32>,
    %c1_44 = arith.constant 1 : index
    %c0_45 = arith.constant 0 : index
    %43 = vector.load %arg13[%c1_44, %c0_45] : memref<8x256xf32, #tpu.memory_space<vmem>>, vector<1x128xf32>
    %c0_46 = arith.constant 0 : index
    %c128_47 = arith.constant 128 : index
    %44 = vector.load %arg14[%c0_46, %c128_47] : memref<9x512xf32, #tpu.memory_space<vmem>>, vector<1x128xf32>
    tpu.vector_store %arg14[%c0_46, %c128_47], %43 {strides = array<i32>} : memref<9x512xf32, #tpu.memory_space<vmem>>, vector<1x128xf32>,
    %c3_48 = arith.constant 3 : index
    %c0_49 = arith.constant 0 : index
    %45 = vector.load %arg13[%c3_48, %c0_49] : memref<8x256xf32, #tpu.memory_space<vmem>>, vector<1x128xf32>
    %c1_50 = arith.constant 1 : index
    %c128_51 = arith.constant 128 : index
    %46 = vector.load %arg14[%c1_50, %c128_51] : memref<9x512xf32, #tpu.memory_space<vmem>>, vector<1x128xf32>
    tpu.vector_store %arg14[%c1_50, %c128_51], %45 {strides = array<i32>} : memref<9x512xf32, #tpu.memory_space<vmem>>, vector<1x128xf32>,
    %c5_52 = arith.constant 5 : index
    %c0_53 = arith.constant 0 : index
    %47 = vector.load %arg13[%c5_52, %c0_53] : memref<8x256xf32, #tpu.memory_space<vmem>>, vector<1x128xf32>
    %c2_54 = arith.constant 2 : index
    %c128_55 = arith.constant 128 : index
    %48 = vector.load %arg14[%c2_54, %c128_55] : memref<9x512xf32, #tpu.memory_space<vmem>>, vector<1x128xf32>
    tpu.vector_store %arg14[%c2_54, %c128_55], %47 {strides = array<i32>} : memref<9x512xf32, #tpu.memory_space<vmem>>, vector<1x128xf32>,
    %c1_56 = arith.constant 1 : index
    %c64_57 = arith.constant 64 : index
    %49 = vector.load %arg13[%c1_56, %c64_57] : memref<8x256xf32, #tpu.memory_space<vmem>>, vector<1x128xf32>
    %c3_58 = arith.constant 3 : index
    %c128_59 = arith.constant 128 : index
    %50 = vector.load %arg14[%c3_58, %c128_59] : memref<9x512xf32, #tpu.memory_space<vmem>>, vector<1x128xf32>
    tpu.vector_store %arg14[%c3_58, %c128_59], %49 {strides = array<i32>} : memref<9x512xf32, #tpu.memory_space<vmem>>, vector<1x128xf32>,
    %c3_60 = arith.constant 3 : index
    %c64_61 = arith.constant 64 : index
    %51 = vector.load %arg13[%c3_60, %c64_61] : memref<8x256xf32, #tpu.memory_space<vmem>>, vector<1x128xf32>
    %c4_62 = arith.constant 4 : index
    %c128_63 = arith.constant 128 : index
    %52 = vector.load %arg14[%c4_62, %c128_63] : memref<9x512xf32, #tpu.memory_space<vmem>>, vector<1x128xf32>
    tpu.vector_store %arg14[%c4_62, %c128_63], %51 {strides = array<i32>} : memref<9x512xf32, #tpu.memory_space<vmem>>, vector<1x128xf32>,
    %c5_64 = arith.constant 5 : index
    %c64_65 = arith.constant 64 : index
    %53 = vector.load %arg13[%c5_64, %c64_65] : memref<8x256xf32, #tpu.memory_space<vmem>>, vector<1x128xf32>
    %c5_66 = arith.constant 5 : index
    %c128_67 = arith.constant 128 : index
    %54 = vector.load %arg14[%c5_66, %c128_67] : memref<9x512xf32, #tpu.memory_space<vmem>>, vector<1x128xf32>
    tpu.vector_store %arg14[%c5_66, %c128_67], %53 {strides = array<i32>} : memref<9x512xf32, #tpu.memory_space<vmem>>, vector<1x128xf32>,
    %c1_68 = arith.constant 1 : index
    %c128_69 = arith.constant 128 : index
    %55 = vector.load %arg13[%c1_68, %c128_69] : memref<8x256xf32, #tpu.memory_space<vmem>>, vector<1x128xf32>
    %c6_70 = arith.constant 6 : index
    %c128_71 = arith.constant 128 : index
    %56 = vector.load %arg14[%c6_70, %c128_71] : memref<9x512xf32, #tpu.memory_space<vmem>>, vector<1x128xf32>
    tpu.vector_store %arg14[%c6_70, %c128_71], %55 {strides = array<i32>} : memref<9x512xf32, #tpu.memory_space<vmem>>, vector<1x128xf32>,
    %c3_72 = arith.constant 3 : index
    %c128_73 = arith.constant 128 : index
    %57 = vector.load %arg13[%c3_72, %c128_73] : memref<8x256xf32, #tpu.memory_space<vmem>>, vector<1x128xf32>
    %c7_74 = arith.constant 7 : index
    %c128_75 = arith.constant 128 : index
    %58 = vector.load %arg14[%c7_74, %c128_75] : memref<9x512xf32, #tpu.memory_space<vmem>>, vector<1x128xf32>
    tpu.vector_store %arg14[%c7_74, %c128_75], %57 {strides = array<i32>} : memref<9x512xf32, #tpu.memory_space<vmem>>, vector<1x128xf32>,
    %c5_76 = arith.constant 5 : index
    %c128_77 = arith.constant 128 : index
    %59 = vector.load %arg13[%c5_76, %c128_77] : memref<8x256xf32, #tpu.memory_space<vmem>>, vector<1x128xf32>
    %c8_78 = arith.constant 8 : index
    %c128_79 = arith.constant 128 : index
    %60 = vector.load %arg14[%c8_78, %c128_79] : memref<9x512xf32, #tpu.memory_space<vmem>>, vector<1x128xf32>
    tpu.vector_store %arg14[%c8_78, %c128_79], %59 {strides = array<i32>} : memref<9x512xf32, #tpu.memory_space<vmem>>, vector<1x128xf32>,
    %c2_80 = arith.constant 2 : index
    %c0_81 = arith.constant 0 : index
    %61 = vector.load %arg13[%c2_80, %c0_81] : memref<8x256xf32, #tpu.memory_space<vmem>>, vector<1x128xf32>
    %c0_82 = arith.constant 0 : index
    %c256 = arith.constant 256 : index
    %62 = vector.load %arg14[%c0_82, %c256] : memref<9x512xf32, #tpu.memory_space<vmem>>, vector<1x128xf32>
    tpu.vector_store %arg14[%c0_82, %c256], %61 {strides = array<i32>} : memref<9x512xf32, #tpu.memory_space<vmem>>, vector<1x128xf32>,
    %c4_83 = arith.constant 4 : index
    %c0_84 = arith.constant 0 : index
    %63 = vector.load %arg13[%c4_83, %c0_84] : memref<8x256xf32, #tpu.memory_space<vmem>>, vector<1x128xf32>
    %c1_85 = arith.constant 1 : index
    %c256_86 = arith.constant 256 : index
    %64 = vector.load %arg14[%c1_85, %c256_86] : memref<9x512xf32, #tpu.memory_space<vmem>>, vector<1x128xf32>
    tpu.vector_store %arg14[%c1_85, %c256_86], %63 {strides = array<i32>} : memref<9x512xf32, #tpu.memory_space<vmem>>, vector<1x128xf32>,
    %c6_87 = arith.constant 6 : index
    %c0_88 = arith.constant 0 : index
    %65 = vector.load %arg13[%c6_87, %c0_88] : memref<8x256xf32, #tpu.memory_space<vmem>>, vector<1x128xf32>
    %c2_89 = arith.constant 2 : index
    %c256_90 = arith.constant 256 : index
    %66 = vector.load %arg14[%c2_89, %c256_90] : memref<9x512xf32, #tpu.memory_space<vmem>>, vector<1x128xf32>
    tpu.vector_store %arg14[%c2_89, %c256_90], %65 {strides = array<i32>} : memref<9x512xf32, #tpu.memory_space<vmem>>, vector<1x128xf32>,
    %c2_91 = arith.constant 2 : index
    %c64_92 = arith.constant 64 : index
    %67 = vector.load %arg13[%c2_91, %c64_92] : memref<8x256xf32, #tpu.memory_space<vmem>>, vector<1x128xf32>
    %c3_93 = arith.constant 3 : index
    %c256_94 = arith.constant 256 : index
    %68 = vector.load %arg14[%c3_93, %c256_94] : memref<9x512xf32, #tpu.memory_space<vmem>>, vector<1x128xf32>
    tpu.vector_store %arg14[%c3_93, %c256_94], %67 {strides = array<i32>} : memref<9x512xf32, #tpu.memory_space<vmem>>, vector<1x128xf32>,
    %c4_95 = arith.constant 4 : index
    %c64_96 = arith.constant 64 : index
    %69 = vector.load %arg13[%c4_95, %c64_96] : memref<8x256xf32, #tpu.memory_space<vmem>>, vector<1x128xf32>
    %c4_97 = arith.constant 4 : index
    %c256_98 = arith.constant 256 : index
    %70 = vector.load %arg14[%c4_97, %c256_98] : memref<9x512xf32, #tpu.memory_space<vmem>>, vector<1x128xf32>
    tpu.vector_store %arg14[%c4_97, %c256_98], %69 {strides = array<i32>} : memref<9x512xf32, #tpu.memory_space<vmem>>, vector<1x128xf32>,
    %c6_99 = arith.constant 6 : index
    %c64_100 = arith.constant 64 : index
    %71 = vector.load %arg13[%c6_99, %c64_100] : memref<8x256xf32, #tpu.memory_space<vmem>>, vector<1x128xf32>
    %c5_101 = arith.constant 5 : index
    %c256_102 = arith.constant 256 : index
    %72 = vector.load %arg14[%c5_101, %c256_102] : memref<9x512xf32, #tpu.memory_space<vmem>>, vector<1x128xf32>
    tpu.vector_store %arg14[%c5_101, %c256_102], %71 {strides = array<i32>} : memref<9x512xf32, #tpu.memory_space<vmem>>, vector<1x128xf32>,
    %c2_103 = arith.constant 2 : index
    %c128_104 = arith.constant 128 : index
    %73 = vector.load %arg13[%c2_103, %c128_104] : memref<8x256xf32, #tpu.memory_space<vmem>>, vector<1x128xf32>
    %c6_105 = arith.constant 6 : index
    %c256_106 = arith.constant 256 : index
    %74 = vector.load %arg14[%c6_105, %c256_106] : memref<9x512xf32, #tpu.memory_space<vmem>>, vector<1x128xf32>
    tpu.vector_store %arg14[%c6_105, %c256_106], %73 {strides = array<i32>} : memref<9x512xf32, #tpu.memory_space<vmem>>, vector<1x128xf32>,
    %c4_107 = arith.constant 4 : index
    %c128_108 = arith.constant 128 : index
    %75 = vector.load %arg13[%c4_107, %c128_108] : memref<8x256xf32, #tpu.memory_space<vmem>>, vector<1x128xf32>
    %c7_109 = arith.constant 7 : index
    %c256_110 = arith.constant 256 : index
    %76 = vector.load %arg14[%c7_109, %c256_110] : memref<9x512xf32, #tpu.memory_space<vmem>>, vector<1x128xf32>
    tpu.vector_store %arg14[%c7_109, %c256_110], %75 {strides = array<i32>} : memref<9x512xf32, #tpu.memory_space<vmem>>, vector<1x128xf32>,
    %c6_111 = arith.constant 6 : index
    %c128_112 = arith.constant 128 : index
    %77 = vector.load %arg13[%c6_111, %c128_112] : memref<8x256xf32, #tpu.memory_space<vmem>>, vector<1x128xf32>
    %c8_113 = arith.constant 8 : index
    %c256_114 = arith.constant 256 : index
    %78 = vector.load %arg14[%c8_113, %c256_114] : memref<9x512xf32, #tpu.memory_space<vmem>>, vector<1x128xf32>
    tpu.vector_store %arg14[%c8_113, %c256_114], %77 {strides = array<i32>} : memref<9x512xf32, #tpu.memory_space<vmem>>, vector<1x128xf32>,
    %c3_115 = arith.constant 3 : index
    %c0_116 = arith.constant 0 : index
    %79 = vector.load %arg13[%c3_115, %c0_116] : memref<8x256xf32, #tpu.memory_space<vmem>>, vector<1x128xf32>
    %c0_117 = arith.constant 0 : index
    %c384 = arith.constant 384 : index
    %80 = vector.load %arg14[%c0_117, %c384] : memref<9x512xf32, #tpu.memory_space<vmem>>, vector<1x128xf32>
    tpu.vector_store %arg14[%c0_117, %c384], %79 {strides = array<i32>} : memref<9x512xf32, #tpu.memory_space<vmem>>, vector<1x128xf32>,
    %c5_118 = arith.constant 5 : index
    %c0_119 = arith.constant 0 : index
    %81 = vector.load %arg13[%c5_118, %c0_119] : memref<8x256xf32, #tpu.memory_space<vmem>>, vector<1x128xf32>
    %c1_120 = arith.constant 1 : index
    %c384_121 = arith.constant 384 : index
    %82 = vector.load %arg14[%c1_120, %c384_121] : memref<9x512xf32, #tpu.memory_space<vmem>>, vector<1x128xf32>
    tpu.vector_store %arg14[%c1_120, %c384_121], %81 {strides = array<i32>} : memref<9x512xf32, #tpu.memory_space<vmem>>, vector<1x128xf32>,
    %c7_122 = arith.constant 7 : index
    %c0_123 = arith.constant 0 : index
    %83 = vector.load %arg13[%c7_122, %c0_123] : memref<8x256xf32, #tpu.memory_space<vmem>>, vector<1x128xf32>
    %c2_124 = arith.constant 2 : index
    %c384_125 = arith.constant 384 : index
    %84 = vector.load %arg14[%c2_124, %c384_125] : memref<9x512xf32, #tpu.memory_space<vmem>>, vector<1x128xf32>
    tpu.vector_store %arg14[%c2_124, %c384_125], %83 {strides = array<i32>} : memref<9x512xf32, #tpu.memory_space<vmem>>, vector<1x128xf32>,
    %c3_126 = arith.constant 3 : index
    %c64_127 = arith.constant 64 : index
    %85 = vector.load %arg13[%c3_126, %c64_127] : memref<8x256xf32, #tpu.memory_space<vmem>>, vector<1x128xf32>
    %c3_128 = arith.constant 3 : index
    %c384_129 = arith.constant 384 : index
    %86 = vector.load %arg14[%c3_128, %c384_129] : memref<9x512xf32, #tpu.memory_space<vmem>>, vector<1x128xf32>
    tpu.vector_store %arg14[%c3_128, %c384_129], %85 {strides = array<i32>} : memref<9x512xf32, #tpu.memory_space<vmem>>, vector<1x128xf32>,
    %c5_130 = arith.constant 5 : index
    %c64_131 = arith.constant 64 : index
    %87 = vector.load %arg13[%c5_130, %c64_131] : memref<8x256xf32, #tpu.memory_space<vmem>>, vector<1x128xf32>
    %c4_132 = arith.constant 4 : index
    %c384_133 = arith.constant 384 : index
    %88 = vector.load %arg14[%c4_132, %c384_133] : memref<9x512xf32, #tpu.memory_space<vmem>>, vector<1x128xf32>
    tpu.vector_store %arg14[%c4_132, %c384_133], %87 {strides = array<i32>} : memref<9x512xf32, #tpu.memory_space<vmem>>, vector<1x128xf32>,
    %c7_134 = arith.constant 7 : index
    %c64_135 = arith.constant 64 : index
    %89 = vector.load %arg13[%c7_134, %c64_135] : memref<8x256xf32, #tpu.memory_space<vmem>>, vector<1x128xf32>
    %c5_136 = arith.constant 5 : index
    %c384_137 = arith.constant 384 : index
    %90 = vector.load %arg14[%c5_136, %c384_137] : memref<9x512xf32, #tpu.memory_space<vmem>>, vector<1x128xf32>
    tpu.vector_store %arg14[%c5_136, %c384_137], %89 {strides = array<i32>} : memref<9x512xf32, #tpu.memory_space<vmem>>, vector<1x128xf32>,
    %c3_138 = arith.constant 3 : index
    %c128_139 = arith.constant 128 : index
    %91 = vector.load %arg13[%c3_138, %c128_139] : memref<8x256xf32, #tpu.memory_space<vmem>>, vector<1x128xf32>
    %c6_140 = arith.constant 6 : index
    %c384_141 = arith.constant 384 : index
    %92 = vector.load %arg14[%c6_140, %c384_141] : memref<9x512xf32, #tpu.memory_space<vmem>>, vector<1x128xf32>
    tpu.vector_store %arg14[%c6_140, %c384_141], %91 {strides = array<i32>} : memref<9x512xf32, #tpu.memory_space<vmem>>, vector<1x128xf32>,
    %c5_142 = arith.constant 5 : index
    %c128_143 = arith.constant 128 : index
    %93 = vector.load %arg13[%c5_142, %c128_143] : memref<8x256xf32, #tpu.memory_space<vmem>>, vector<1x128xf32>
    %c7_144 = arith.constant 7 : index
    %c384_145 = arith.constant 384 : index
    %94 = vector.load %arg14[%c7_144, %c384_145] : memref<9x512xf32, #tpu.memory_space<vmem>>, vector<1x128xf32>
    tpu.vector_store %arg14[%c7_144, %c384_145], %93 {strides = array<i32>} : memref<9x512xf32, #tpu.memory_space<vmem>>, vector<1x128xf32>,
    %c7_146 = arith.constant 7 : index
    %c128_147 = arith.constant 128 : index
    %95 = vector.load %arg13[%c7_146, %c128_147] : memref<8x256xf32, #tpu.memory_space<vmem>>, vector<1x128xf32>
    %c8_148 = arith.constant 8 : index
    %c384_149 = arith.constant 384 : index
    %96 = vector.load %arg14[%c8_148, %c384_149] : memref<9x512xf32, #tpu.memory_space<vmem>>, vector<1x128xf32>
    tpu.vector_store %arg14[%c8_148, %c384_149], %95 {strides = array<i32>} : memref<9x512xf32, #tpu.memory_space<vmem>>, vector<1x128xf32>,
    %c0_150 = arith.constant 0 : index
    %c0_151 = arith.constant 0 : index
    %97 = vector.load %arg14[%c0_150, %c0_151] : memref<9x512xf32, #tpu.memory_space<vmem>>, vector<9x512xf32>
    %98 = arith.truncf %97 : vector<9x512xf32> to vector<9x512xbf16>
    %c0_152 = arith.constant 0 : index
    %c0_153 = arith.constant 0 : index
    %99 = vector.load %arg4[%c0_152, %c0_153] : memref<512x64xbf16, #tpu.memory_space<vmem>>, vector<512x64xbf16>
    %cst_154 = arith.constant dense<0.000000e+00> : vector<9x64xf32>
    %100 = tpu.matmul %98, %99, %cst_154 {dimension_numbers = #tpu.dot_dimension_numbers<[1], [0], [0], [1], [0, 0, 1, 1], [], []>} : vector<9x512xbf16>, vector<512x64xbf16>, vector<9x64xf32> -> vector<9x64xf32>
    %c0_155 = arith.constant 0 : index
    %c0_156 = arith.constant 0 : index
    %101 = vector.load %arg5[%c0_155, %c0_156] : memref<1x64xf32, #tpu.memory_space<vmem>>, vector<1x64xf32>
    %102 = vector.broadcast %101 : vector<1x64xf32> to vector<9x64xf32>
    %103 = arith.addf %100, %102 : vector<9x64xf32>
    %cst_157 = arith.constant 0.000000e+00 : f32
    %104 = vector.broadcast %cst_157 : f32 to vector<9x64xf32>
    %105 = arith.maximumf %103, %104 : vector<9x64xf32>
    %106 = vector.extract_strided_slice %105 {offsets = [0, 0], sizes = [3, 64], strides = [1, 1]} : vector<9x64xf32> to vector<3x64xf32>
    %c0_158 = arith.constant 0 : index
    %c0_159 = arith.constant 0 : index
    %107 = vector.load %arg15[%c0_158, %c0_159] : memref<3x192xf32, #tpu.memory_space<vmem>>, vector<3x64xf32>
    tpu.vector_store %arg15[%c0_158, %c0_159], %106 {strides = array<i32>} : memref<3x192xf32, #tpu.memory_space<vmem>>, vector<3x64xf32>,
    %108 = vector.extract_strided_slice %105 {offsets = [3, 0], sizes = [3, 64], strides = [1, 1]} : vector<9x64xf32> to vector<3x64xf32>
    %c0_160 = arith.constant 0 : index
    %c64_161 = arith.constant 64 : index
    %109 = vector.load %arg15[%c0_160, %c64_161] : memref<3x192xf32, #tpu.memory_space<vmem>>, vector<3x64xf32>
    tpu.vector_store %arg15[%c0_160, %c64_161], %108 {strides = array<i32>} : memref<3x192xf32, #tpu.memory_space<vmem>>, vector<3x64xf32>,
    %110 = vector.extract_strided_slice %105 {offsets = [6, 0], sizes = [3, 64], strides = [1, 1]} : vector<9x64xf32> to vector<3x64xf32>
    %c0_162 = arith.constant 0 : index
    %c128_163 = arith.constant 128 : index
    %111 = vector.load %arg15[%c0_162, %c128_163] : memref<3x192xf32, #tpu.memory_space<vmem>>, vector<3x64xf32>
    tpu.vector_store %arg15[%c0_162, %c128_163], %110 {strides = array<i32>} : memref<3x192xf32, #tpu.memory_space<vmem>>, vector<3x64xf32>,
    %c0_164 = arith.constant 0 : index
    %c0_165 = arith.constant 0 : index
    %112 = vector.load %arg15[%c0_164, %c0_165] : memref<3x192xf32, #tpu.memory_space<vmem>>, vector<1x192xf32>
    %c0_166 = arith.constant 0 : index
    %c0_167 = arith.constant 0 : index
    %113 = vector.load %arg16[%c0_166, %c0_167] : memref<1x576xf32, #tpu.memory_space<vmem>>, vector<1x192xf32>
    tpu.vector_store %arg16[%c0_166, %c0_167], %112 {strides = array<i32>} : memref<1x576xf32, #tpu.memory_space<vmem>>, vector<1x192xf32>,
    %c1_168 = arith.constant 1 : index
    %c0_169 = arith.constant 0 : index
    %114 = vector.load %arg15[%c1_168, %c0_169] : memref<3x192xf32, #tpu.memory_space<vmem>>, vector<1x192xf32>
    %c0_170 = arith.constant 0 : index
    %c192_171 = arith.constant 192 : index
    %115 = vector.load %arg16[%c0_170, %c192_171] : memref<1x576xf32, #tpu.memory_space<vmem>>, vector<1x192xf32>
    tpu.vector_store %arg16[%c0_170, %c192_171], %114 {strides = array<i32>} : memref<1x576xf32, #tpu.memory_space<vmem>>, vector<1x192xf32>,
    %c2_172 = arith.constant 2 : index
    %c0_173 = arith.constant 0 : index
    %116 = vector.load %arg15[%c2_172, %c0_173] : memref<3x192xf32, #tpu.memory_space<vmem>>, vector<1x192xf32>
    %c0_174 = arith.constant 0 : index
    %c384_175 = arith.constant 384 : index
    %117 = vector.load %arg16[%c0_174, %c384_175] : memref<1x576xf32, #tpu.memory_space<vmem>>, vector<1x192xf32>
    tpu.vector_store %arg16[%c0_174, %c384_175], %116 {strides = array<i32>} : memref<1x576xf32, #tpu.memory_space<vmem>>, vector<1x192xf32>,
    %c0_176 = arith.constant 0 : index
    %c0_177 = arith.constant 0 : index
    %118 = vector.load %arg16[%c0_176, %c0_177] : memref<1x576xf32, #tpu.memory_space<vmem>>, vector<1x576xf32>
    %119 = arith.truncf %118 : vector<1x576xf32> to vector<1x576xbf16>
    %c0_178 = arith.constant 0 : index
    %c0_179 = arith.constant 0 : index
    %120 = vector.load %arg6[%c0_178, %c0_179] : memref<576x64xbf16, #tpu.memory_space<vmem>>, vector<576x64xbf16>
    %cst_180 = arith.constant dense<0.000000e+00> : vector<1x64xf32>
    %121 = tpu.matmul %119, %120, %cst_180 {dimension_numbers = #tpu.dot_dimension_numbers<[1], [0], [0], [1], [0, 0, 1, 1], [], []>} : vector<1x576xbf16>, vector<576x64xbf16>, vector<1x64xf32> -> vector<1x64xf32>
    %c0_181 = arith.constant 0 : index
    %c0_182 = arith.constant 0 : index
    %122 = vector.load %arg7[%c0_181, %c0_182] : memref<1x64xf32, #tpu.memory_space<vmem>>, vector<1x64xf32>
    %123 = arith.addf %121, %122 : vector<1x64xf32>
    %cst_183 = arith.constant 0.000000e+00 : f32
    %124 = vector.broadcast %cst_183 : f32 to vector<1x64xf32>
    %125 = arith.maximumf %123, %124 : vector<1x64xf32>
    %c0_184 = arith.constant 0 : index
    %c0_185 = arith.constant 0 : index
    %126 = vector.load %arg17[%c0_184, %c0_185] : memref<1x64xf32, #tpu.memory_space<vmem>>, vector<1x64xf32>
    tpu.vector_store %arg17[%c0_184, %c0_185], %125 {strides = array<i32>} : memref<1x64xf32, #tpu.memory_space<vmem>>, vector<1x64xf32>,
    %c0_186 = arith.constant 0 : index
    %c0_187 = arith.constant 0 : index
    %127 = vector.load %arg17[%c0_186, %c0_187] : memref<1x64xf32, #tpu.memory_space<vmem>>, vector<1x64xf32>
    %128 = arith.truncf %127 : vector<1x64xf32> to vector<1x64xbf16>
    %c0_188 = arith.constant 0 : index
    %c0_189 = arith.constant 0 : index
    %129 = vector.load %arg8[%c0_188, %c0_189] : memref<64x512xbf16, #tpu.memory_space<vmem>>, vector<64x512xbf16>
    %cst_190 = arith.constant dense<0.000000e+00> : vector<1x512xf32>
    %130 = tpu.matmul %128, %129, %cst_190 {dimension_numbers = #tpu.dot_dimension_numbers<[1], [0], [0], [1], [0, 0, 1, 1], [], []>} : vector<1x64xbf16>, vector<64x512xbf16>, vector<1x512xf32> -> vector<1x512xf32>
    %c0_191 = arith.constant 0 : index
    %c0_192 = arith.constant 0 : index
    %131 = vector.load %arg9[%c0_191, %c0_192] : memref<1x512xf32, #tpu.memory_space<vmem>>, vector<1x512xf32>
    %132 = arith.addf %130, %131 : vector<1x512xf32>
    %cst_193 = arith.constant 0.000000e+00 : f32
    %133 = vector.broadcast %cst_193 : f32 to vector<1x512xf32>
    %134 = arith.maximumf %132, %133 : vector<1x512xf32>
    %135 = arith.truncf %134 : vector<1x512xf32> to vector<1x512xbf16>
    %c0_194 = arith.constant 0 : index
    %c0_195 = arith.constant 0 : index
    %136 = vector.load %arg10[%c0_194, %c0_195] : memref<512x6xbf16, #tpu.memory_space<vmem>>, vector<512x6xbf16>
    %cst_196 = arith.constant dense<0.000000e+00> : vector<1x6xf32>
    %137 = tpu.matmul %135, %136, %cst_196 {dimension_numbers = #tpu.dot_dimension_numbers<[1], [0], [0], [1], [0, 0, 1, 1], [], []>} : vector<1x512xbf16>, vector<512x6xbf16>, vector<1x6xf32> -> vector<1x6xf32>
    %c0_197 = arith.constant 0 : index
    %c0_198 = arith.constant 0 : index
    %138 = vector.load %arg11[%c0_197, %c0_198] : memref<1x6xf32, #tpu.memory_space<vmem>>, vector<1x6xf32>
    %139 = arith.addf %137, %138 : vector<1x6xf32>
    %c0_199 = arith.constant 0 : index
    %c0_200 = arith.constant 0 : index
    %c0_201 = arith.constant 0 : index
    %140 = vector.load %arg12[%c0_199, %c0_200, %c0_201] : memref<1x1x6xf32, #tpu.memory_space<vmem>>, vector<1x1x6xf32>
    %141 = vector.shape_cast %140 : vector<1x1x6xf32> to vector<1x6xf32>
    %142 = vector.shape_cast %139 : vector<1x6xf32> to vector<1x1x6xf32>
    tpu.vector_store %arg12[%c0_199, %c0_200, %c0_201], %142 {strides = array<i32>} : memref<1x1x6xf32, #tpu.memory_space<vmem>>, vector<1x1x6xf32>,
    return
  }
  func.func @transform_0(%arg0: i32) -> (i32, i32, i32) {
    %c0_i32 = arith.constant 0 : i32
    %c0_i32_0 = arith.constant 0 : i32
    %c0_i32_1 = arith.constant 0 : i32
    return %arg0, %c0_i32, %c0_i32_0 : i32, i32, i32
  }
  func.func @transform_1(%arg0: i32) -> (i32, i32) {
    %c0_i32 = arith.constant 0 : i32
    %c0_i32_0 = arith.constant 0 : i32
    %c0_i32_1 = arith.constant 0 : i32
    return %c0_i32, %c0_i32_0 : i32, i32
  }
  func.func @transform_2(%arg0: i32) -> (i32, i32) {
    %c0_i32 = arith.constant 0 : i32
    %c0_i32_0 = arith.constant 0 : i32
    %c0_i32_1 = arith.constant 0 : i32
    return %c0_i32, %c0_i32_0 : i32, i32
  }
  func.func @transform_3(%arg0: i32) -> (i32, i32) {
    %c0_i32 = arith.constant 0 : i32
    %c0_i32_0 = arith.constant 0 : i32
    %c0_i32_1 = arith.constant 0 : i32
    return %c0_i32, %c0_i32_0 : i32, i32
  }
  func.func @transform_4(%arg0: i32) -> (i32, i32) {
    %c0_i32 = arith.constant 0 : i32
    %c0_i32_0 = arith.constant 0 : i32
    %c0_i32_1 = arith.constant 0 : i32
    return %c0_i32, %c0_i32_0 : i32, i32
  }
  func.func @transform_5(%arg0: i32) -> (i32, i32) {
    %c0_i32 = arith.constant 0 : i32
    %c0_i32_0 = arith.constant 0 : i32
    %c0_i32_1 = arith.constant 0 : i32
    return %c0_i32, %c0_i32_0 : i32, i32
  }
  func.func @transform_6(%arg0: i32) -> (i32, i32) {
    %c0_i32 = arith.constant 0 : i32
    %c0_i32_0 = arith.constant 0 : i32
    %c0_i32_1 = arith.constant 0 : i32
    return %c0_i32, %c0_i32_0 : i32, i32
  }
  func.func @transform_7(%arg0: i32) -> (i32, i32) {
    %c0_i32 = arith.constant 0 : i32
    %c0_i32_0 = arith.constant 0 : i32
    %c0_i32_1 = arith.constant 0 : i32
    return %c0_i32, %c0_i32_0 : i32, i32
  }
  func.func @transform_8(%arg0: i32) -> (i32, i32) {
    %c0_i32 = arith.constant 0 : i32
    %c0_i32_0 = arith.constant 0 : i32
    %c0_i32_1 = arith.constant 0 : i32
    return %c0_i32, %c0_i32_0 : i32, i32
  }
  func.func @transform_9(%arg0: i32) -> (i32, i32) {
    %c0_i32 = arith.constant 0 : i32
    %c0_i32_0 = arith.constant 0 : i32
    %c0_i32_1 = arith.constant 0 : i32
    return %c0_i32, %c0_i32_0 : i32, i32
  }
  func.func @transform_10(%arg0: i32) -> (i32, i32) {
    %c0_i32 = arith.constant 0 : i32
    %c0_i32_0 = arith.constant 0 : i32
    %c0_i32_1 = arith.constant 0 : i32
    return %c0_i32, %c0_i32_0 : i32, i32
  }
  func.func @transform_11(%arg0: i32) -> (i32, i32, i32) {
    %c0_i32 = arith.constant 0 : i32
    %c0_i32_0 = arith.constant 0 : i32
    %c0_i32_1 = arith.constant 0 : i32
    return %arg0, %c0_i32, %c0_i32_0 : i32, i32, i32
  }
}

</mosaic_0001>

<bundles_post_ra>
// kernel: deep_q_forward.1
= control target key start
LH: loop header
LB: loop body
LE: loop exit
PB: predicated region body
PF: predicated region fallthrough
CT: control target
= control target key end

     0   :  { %16 = vsyncpa [#allocation8], 0  ;;  %s3676_s0 = inlined_call_operand.vmem [shape: bf16[2,64,256], index: 0, kind: input, shape index: {}]   ;;  %s3677_s1 = inlined_call_operand.vmem [shape: bf16[256,32], index: 1, kind: input, shape index: {}]   ;;  %s3678_s2 = inlined_call_operand.vmem [shape: f32[1,32], index: 2, kind: input, shape index: {}]   ;;  %s3679_s3 = inlined_call_operand.vmem [shape: bf16[512,64], index: 3, kind: input, shape index: {}]   ;;  %s3680_s4 = inlined_call_operand.vmem [shape: f32[1,64], index: 4, kind: input, shape index: {}]   ;;  %s3681_s5 = inlined_call_operand.vmem [shape: bf16[576,64], index: 5, kind: input, shape index: {}]   ;;  %s3682_s6 = inlined_call_operand.vmem [shape: f32[1,64], index: 6, kind: input, shape index: {}]   ;;  %s3683_s7 = inlined_call_operand.vmem [shape: bf16[64,512], index: 7, kind: input, shape index: {}]   ;;  %s3684_s8 = inlined_call_operand.vmem [shape: f32[1,512], index: 8, kind: input, shape index: {}]   ;;  %s3685_s9 = inlined_call_operand.vmem [shape: bf16[512,6], index: 9, kind: input, shape index: {}]   ;;  %s3686_s10 = inlined_call_operand.vmem [shape: f32[1,6], index: 10, kind: input, shape index: {}]   ;;  %s3687_s11 = inlined_call_operand.hbm [shape: f32[2,1,6], index: 11, kind: output, shape index: {}]  }
   0x1   :  { %18 = vsyncpa [#allocation8 + $0x1], 0  ;;  %s3046_s17 = smov 0   ;;  %s3048_s18 = smov 0  }
   0x2   :  { %s3050_s19 = smov 0   ;;  %s3052_s20 = smov 0  }
   0x3 LB: > { %3691 = sst [smem:[#allocation10_spill]] %s2977_s19  ;;  %s3067_s21 = sadd.s32 4294967295, %s2981_s20   ;;  %s2981_s20 = sphi %s3052_s20, %s3696_s20   ;;  %s2977_s19 = sphi %s3050_s19, %s3698_s19   ;;  %s2973_s18 = sphi %s3048_s18, %s3700_s18   ;;  %s2969_s17 = sphi %s3046_s17, %s3699_s17  }
   0x4   : > { %s2158_s22 = sadd.s32 4294967294, %s2981_s20   ;;  %s3071_s23 = sadd.s32 1, %s2981_s20  }
   0x5   : > { %3692 = sst [smem:[#allocation11_spill]] %s3071_s23  ;;  %s267_s24 = sadd.s32 1, %s2977_s19 }
   0x6   : > { %s264_s25 = ssub.s32 %s2981_s20, %s3071_s23  ;;  %p277_p0 = scmp.ne.s32.totalorder %s2977_s19, %s2973_s18 }
   0x7   : > { %p265_p1 = scmp.eq.s32.totalorder %s264_s25, 0  ;;  %p278_p2 = scmp.eq.s32.totalorder %s3067_s21, 1 }
   0x8   : > { %p283_p3 = scmp.ne.s32.totalorder %s2973_s18, %s2969_s17  ;;  %p284_p4 = scmp.eq.s32.totalorder %s2158_s22, 1 }
   0x9   : > { %s3082_s26 = scalar_select %p265_p1, %s2977_s19, %s267_s24  }
   0xa   : > { %p3084_p5 = por %p278_p2, %p277_p0  ;;  %p3088_p6 = por %p284_p4, %p283_p3 }
   0xb   : > { %3693 = sst [smem:[#allocation12_spill]] %s3082_s26  ;;  %p2161_p7 = scmp.ge.s32.totalorder %s2981_s20, 1 }
   0xc   : > { %p340_p8 = scmp.lt.s32.totalorder %s2981_s20, 3 }
   0xe   : > { %p341_p9 = pnand %p2161_p7, %p340_p8 }
   0xf   : > { %p379_p10 = scmp.lt.s32.totalorder (!%p341_p9), %s3067_s21, 1  ;;  %s2983_s26 = smov (!%p341_p9), 32  }
  0x10   : > { %344 = sbr.rel (%p341_p9) target bundleno = 1344 (0x540), region = 64  ;;  %s2984_s14 = smov (!%p341_p9), 64  }
  0x11   : > { %s377_s13 = sand.u32 (!%p341_p9), 1, %s2973_s18  }
  0x12   : > { %s2091_s24 = scalar_lea.sflag (!%p341_p9), [#allocation8], %s377_s13 }
  0x15   : > { %v2750_v0 = vld [vmem:[%s3677_s1 + $0x38] sm:$0xff]  ;;  %v2749_v2 = vld [vmem:[%s3677_s1 + $0x30] sm:$0xff]  ;;  %v2748_v4 = vld [vmem:[%s3677_s1 + $0x28] sm:$0xff]  ;;  %s380_s29 = scalar_select %p379_p10, %s3067_s21, 1  ;;  %vm631_vm0 = vcmask 261120   ;;  %vm637_vm1 = vcmask 523520  }
  0x16   : > { %v2758_v1 = vld [vmem:[%s3677_s1 + $0x78] sm:$0xff]  ;;  %565 = vmatpush.bf16.msra.mxu0 %v2750_v0  ;;  %v2757_v3 = vld [vmem:[%s3677_s1 + $0x70] sm:$0xff]  ;;  %v2756_v5 = vld [vmem:[%s3677_s1 + $0x68] sm:$0xff]  ;;  %vm643_vm2 = vcmask 785920   ;;  %vm649_vm3 = vcmask 1048320   ;;  %vm681_vm4 = vcmask 523264  }
  0x17   : > { %594 = vmatpush.bf16.msra.mxu1 %v2758_v1  ;;  %v2747_v6 = vld [vmem:[%s3677_s1 + $0x20] sm:$0xff]  ;;  %v2746_v8 = vld [vmem:[%s3677_s1 + $0x18] sm:$0xff]  ;;  %v2745_v10 = vld [vmem:[%s3677_s1 + $0x10] sm:$0xff]  ;;  %s2734_s15 = sshll.u32 %s380_s29, 6  ;;  %vm1178_vm5 = vcmask 518144   ;;  %vm1201_vm6 = vcmask 1041408  }
  0x18   : > { %v2755_v7 = vld [vmem:[%s3677_s1 + $0x60] sm:$0xff]  ;;  %v2754_v9 = vld [vmem:[%s3677_s1 + $0x58] sm:$0xff]  ;;  %v2753_v11 = vld [vmem:[%s3677_s1 + $0x50] sm:$0xff]  ;;  %s3141_s30 = scalar_lea.vmem %s3676_s0, %s2734_s15  ;;  %s2985_s15 = smov 96   ;;  %vm1202_vm7 = vcmask 1045508   ;;  %vm1192_vm9 = vcmask 1042944  }
  0x19   : > { %v2744_v12 = vld [vmem:[%s3677_s1 + $0x8] sm:$0xff]  ;;  %v2743_v14 = vld [vmem:[%s3677_s1] sm:$0xff]  ;;  %v2174_v22 = vld [vmem:[%s3141_s30 + $0x10] sm:$0xf]  ;;  %vm1606_vm14 = vcmask 516096   ;;  %vm2088_vm15 = vcmask 40960  }
  0x1a   : > { %566 = vmatpush.bf16.msra.mxu0 %v2749_v2  ;;  %v2752_v13 = vld [vmem:[%s3677_s1 + $0x48] sm:$0xff]  ;;  %v2751_v15 = vld [vmem:[%s3677_s1 + $0x40] sm:$0xff]  ;;  %v2738_v23 = vld [vmem:[%s3141_s30 + $0x14] sm:$0xf0] }
  0x1b   : > { %595 = vmatpush.bf16.msra.mxu1 %v2757_v3  ;;  %v2166_v16 = vld [vmem:[%s3141_s30] sm:$0xf]  ;;  %v2736_v17 = vld [vmem:[%s3141_s30 + $0x4] sm:$0xf0]  ;;  %v2735_v18 = vld [vmem:[%s3141_s30 + $0x4] sm:$0xf]  ;;  %v2175_v26 = vor.u32 %v2738_v23, %v2174_v22 }
  0x1c   : > { %v2168_v19 = vld [vmem:[%s3141_s30 + $0x8] sm:$0xf0]  ;;  %v2167_v20 = vor.u32 %v2736_v17, %v2166_v16  ;;  %v2737_v24 = vld [vmem:[%s3141_s30 + $0x14] sm:$0xf]  ;;  %v2176_v25 = vld [vmem:[%s3141_s30 + $0x18] sm:$0xf0] }
  0x1d   : > { %v2171_v21 = vor.u32 %v2735_v18, %v2168_v19  ;;  %v2179_v27 = vor.u32 %v2737_v24, %v2176_v25  ;;  %v2182_v28 = vld [vmem:[%s3141_s30 + $0x20] sm:$0xf]  ;;  %v2740_v29 = vld [vmem:[%s3141_s30 + $0x24] sm:$0xf0]  ;;  %v2739_v30 = vld [vmem:[%s3141_s30 + $0x24] sm:$0xf] }
  0x1e   : > { %567 = vmatpush.bf16.msra.mxu0 %v2748_v4  ;;  %v2184_v31 = vld [vmem:[%s3141_s30 + $0x28] sm:$0xf0]  ;;  %v2183_v32 = vor.u32 %v2740_v29, %v2182_v28  ;;  %v2190_v34 = vld [vmem:[%s3141_s30 + $0x30] sm:$0xf]  ;;  %v2742_v35 = vld [vmem:[%s3141_s30 + $0x34] sm:$0xf0] }
  0x1f   : > { %596 = vmatpush.bf16.msra.mxu1 %v2756_v5  ;;  %v2187_v33 = vor.u32 %v2739_v30, %v2184_v31  ;;  %v2741_v36 = vld [vmem:[%s3141_s30 + $0x34] sm:$0xf]  ;;  %v2192_v37 = vld [vmem:[%s3141_s30 + $0x38] sm:$0xf0]  ;;  %v2191_v38 = vor.u32 %v2742_v35, %v2190_v34  ;;  %v2917_v40 = vld [vmem:[%s3678_s2] ss:$0 sm:$0xff] }
  0x20   : > { %v2195_v39 = vor.u32 %v2741_v36, %v2192_v37  ;;  %vm1203_vm8 = vmor %vm1201_vm6, %vm1202_vm7 }
  0x22   : > { %568 = vmatpush.bf16.msra.mxu0 %v2747_v6 }
  0x23   : > { %597 = vmatpush.bf16.msra.mxu1 %v2755_v7 }
  0x26   : > { %569 = vmatpush.bf16.msra.mxu0 %v2746_v8 }
  0x27   : > { %598 = vmatpush.bf16.msra.mxu1 %v2754_v9 }
  0x2a   : > { %570 = vmatpush.bf16.msra.mxu0 %v2745_v10 }
  0x2b   : > { %599 = vmatpush.bf16.msra.mxu1 %v2753_v11 }
  0x2e   : > { %571 = vmatpush.bf16.msra.mxu0 %v2744_v12 }
  0x2f   : > { %600 = vmatpush.bf16.msra.mxu1 %v2752_v13 }
  0x32   : > { %572 = vmatpush.bf16.msra.mxu0 %v2743_v14 }
  0x33   : > { %601 = vmatpush.bf16.msra.mxu1 %v2751_v15 }
  0x35   : > { %573 = vmatmul.bf16.vlgmr.msra.gmra.mxu0 %v2167_v20 }
  0x36   : > { %602 = vmatmul.bf16.vlgmr.msra.gmra.mxu1 %v2171_v21 }
  0x45   : > { %578 = vmatmul.bf16.gmra.mxu0 %v2175_v26 }
  0x46   : > { %607 = vmatmul.bf16.gmra.mxu1 %v2179_v27 }
  0x55   : > { %583 = vmatmul.bf16.gmra.mxu0 %v2183_v32 }
  0x56   : > { %612 = vmatmul.bf16.gmra.mxu1 %v2187_v33 }
  0x65   : > { %588 = vmatmul.bf16.gmra.mxu0 %v2191_v38 }
  0x66   : > { %617 = vmatmul.bf16.gmra.mxu1 %v2195_v39  ;;  %v2766_v39 = vld [vmem:[%s3679_s3 + $0x38] sm:$0xff] }
  0x67   : > { %1120 = vmatpush.bf16.msra.mxu2 %v2766_v39 }
  0xb2   : > { %v574_v41 = vpop.f32.mrf.mxu0 }
  0xb3   : > { %v603_v42 = vpop.f32.mrf.mxu1  ;;  %v575_v43 = vadd.f32 %v2917_v40, %v574_v41  ;;  %v2764_v41 = vld [vmem:[%s3679_s3 + $0x28] sm:$0xff] }
  0xb5   : > { %v604_v44 = vadd.f32 %v603_v42, %v575_v43  ;;  %v2763_v43 = vld [vmem:[%s3679_s3 + $0x20] sm:$0xff] }
  0xb7   : > { %v623_v45 = vmax.f32 %v604_v44, 0.0  ;;  %v2774_v44 = vld [vmem:[%s3679_s3 + $0x78] sm:$0xff] }
  0xb8   : > { %1134 = vmatpush.bf16.msra.mxu3 %v2774_v44 }
  0xb9   : > { %632 = vst.msk [vmem:[#allocation2] sm:$0xff] %vm631_vm0, %v623_v45  ;;  %v2762_v45 = vld [vmem:[%s3679_s3 + $0x18] sm:$0xff] }
  0xba   : > { %v576_v46 = vpop.f32.mrf.mxu0 }
  0xbb   : > { %v605_v47 = vpop.f32.mrf.mxu1  ;;  %v577_v48 = vadd.f32 %v2917_v40, %v576_v46 }
  0xbd   : > { %v606_v49 = vadd.f32 %v605_v47, %v577_v48  ;;  %v2761_v47 = vld [vmem:[%s3679_s3 + $0x10] sm:$0xff] }
  0xbe   : > { %v2773_v48 = vld [vmem:[%s3679_s3 + $0x70] sm:$0xff] }
  0xbf   : > { %v624_v50 = vmax.f32 %v606_v49, 0.0  ;;  %1135 = vmatpush.bf16.msra.mxu3 %v2773_v48  ;;  %v2760_v49 = vld [vmem:[%s3679_s3 + $0x8] sm:$0xff] }
  0xc1   : > { %634 = vrot.lane.b32.xlu0 %v624_v50, %s2983_s26  ;;  %v2772_v50 = vld [vmem:[%s3679_s3 + $0x68] sm:$0xff] }
  0xc2   : > { %v579_v51 = vpop.f32.mrf.mxu0 }
  0xc3   : > { %v608_v52 = vpop.f32.mrf.mxu1  ;;  %v580_v53 = vadd.f32 %v2917_v40, %v579_v51  ;;  %1136 = vmatpush.bf16.msra.mxu3 %v2772_v50 }
  0xc5   : > { %v609_v54 = vadd.f32 %v608_v52, %v580_v53  ;;  %v2759_v52 = vld [vmem:[%s3679_s3] sm:$0xff] }
  0xc6   : > { %v2771_v53 = vld [vmem:[%s3679_s3 + $0x60] sm:$0xff] }
  0xc7   : > { %v625_v55 = vmax.f32 %v609_v54, 0.0  ;;  %v2782_v54 = vld [vmem:[%s3679_s3 + $0xb8] sm:$0xff]  ;;  %1137 = vmatpush.bf16.msra.mxu3 %v2771_v53 }
  0xc9   : > { %640 = vrot.lane.b32.xlu1 %v625_v55, %s2984_s14  ;;  %v2770_v55 = vld [vmem:[%s3679_s3 + $0x58] sm:$0xff] }
  0xca   : > { %v581_v56 = vpop.f32.mrf.mxu0 }
  0xcb   : > { %v610_v57 = vpop.f32.mrf.mxu1  ;;  %v582_v58 = vadd.f32 %v2917_v40, %v581_v56  ;;  %1138 = vmatpush.bf16.msra.mxu3 %v2770_v55 }
  0xcd   : > { %v611_v59 = vadd.f32 %v610_v57, %v582_v58 }
  0xcf   : > { %v626_v60 = vmax.f32 %v611_v59, 0.0  ;;  %v2781_v59 = vld [vmem:[%s3679_s3 + $0xb0] sm:$0xff] }
  0xd1   : > { %646 = vrot.lane.b32.xlu2 %v626_v60, %s2985_s15  ;;  %v2769_v60 = vld [vmem:[%s3679_s3 + $0x50] sm:$0xff] }
  0xd2   : > { %v584_v61 = vpop.f32.mrf.mxu0  ;;  %1139 = vmatpush.bf16.msra.mxu3 %v2769_v60 }
  0xd3   : > { %v613_v62 = vpop.f32.mrf.mxu1  ;;  %v585_v63 = vadd.f32 %v2917_v40, %v584_v61  ;;  %v2780_v61 = vld [vmem:[%s3679_s3 + $0xa8] sm:$0xff] }
  0xd5   : > { %v614_v0 = vadd.f32 %v613_v62, %v585_v63  ;;  %v2768_v62 = vld [vmem:[%s3679_s3 + $0x48] sm:$0xff] }
  0xd6   : > { %1140 = vmatpush.bf16.msra.mxu3 %v2768_v62 }
  0xd7   : > { %v627_v1 = vmax.f32 %v614_v0, 0.0 }
  0xd9   : > { %651 = vst.msk [vmem:[#allocation2 + $0x8] sm:$0xff] %vm631_vm0, %v627_v1 }
  0xda   : > { %v586_v2 = vpop.f32.mrf.mxu0 }
  0xdb   : > { %v615_v3 = vpop.f32.mrf.mxu1  ;;  %v587_v4 = vadd.f32 %v2917_v40, %v586_v2  ;;  %v2779_v2 = vld [vmem:[%s3679_s3 + $0xa0] sm:$0xff] }
  0xdd   : > { %v616_v5 = vadd.f32 %v615_v3, %v587_v4  ;;  %v2767_v4 = vld [vmem:[%s3679_s3 + $0x40] sm:$0xff] }
  0xde   : > { %1141 = vmatpush.bf16.msra.mxu3 %v2767_v4 }
  0xdf   : > { %v628_v6 = vmax.f32 %v616_v5, 0.0  ;;  %v2778_v5 = vld [vmem:[%s3679_s3 + $0x98] sm:$0xff] }
  0xe1   : > { %653 = vrot.lane.b32.xlu0 %v628_v6, %s2983_s26  ;;  %v2790_v6 = vld [vmem:[%s3679_s3 + $0xf8] sm:$0xff]  ;;  %s2099_s26 = scalar_lea.hbm %s3687_s11, %s3067_s21 }
  0xe2   : > { %v589_v7 = vpop.f32.mrf.mxu0  ;;  %1162 = vmatpush.bf16.msrb.mxu3 %v2790_v6  ;;  %s2103_s22 = sshll.u32 %s2099_s26, 4  ;;  %s2104_s22 = int_to_ptr.hbm [resolvable:$true] %s2103_s22 }
  0xe3   : > { %v618_v8 = vpop.f32.mrf.mxu1  ;;  %v590_v9 = vadd.f32 %v2917_v40, %v589_v7  ;;  %s2933_s25 = sshra.s32 %s2104_s22, 4  ;;  %s2934_s25 = int_to_ptr.hbm [resolvable:$true] %s2933_s25 }
  0xe4   : > { %s2935_s30 = scalar_lea.hbm %s2934_s25, 1  ;;  %p2940_p0 = scmp.lt.s32.totalorder %s2934_s25, %s3687_s11 }
  0xe5   : > { %v619_v10 = vadd.f32 %v618_v8, %v590_v9  ;;  %p2936_p11 = scmp.ne.s32.totalorder %s2934_s25, %s2935_s30 }
  0xe7   : > { %v629_v11 = vmax.f32 %v619_v10, 0.0  ;;  %v2777_v10 = vld [vmem:[%s3679_s3 + $0x90] sm:$0xff]  ;;  %p2937_p12 = pnand %p2936_p11, %p3084_p5 }
  0xe9   : > { %658 = vrot.lane.b32.xlu1 %v629_v11, %s2984_s14  ;;  %v2789_v11 = vld [vmem:[%s3679_s3 + $0xf0] sm:$0xff]  ;;  %p2938_p13 = pneg %p2937_p12 }
  0xea   : > { %v591_v12 = vpop.f32.mrf.mxu0  ;;  %1163 = vmatpush.bf16.msrb.mxu3 %v2789_v11 }
  0xeb   : > { %v592_v13 = vadd.f32 %v2917_v40, %v591_v12  ;;  %v620_v14 = vpop.f32.mrf.mxu1  ;;  %v2765_v40 = vld [vmem:[%s3679_s3 + $0x30] sm:$0xff]  ;;  %v2776_v12 = vld [vmem:[%s3679_s3 + $0x88] sm:$0xff] }
  0xec   : > { %1121 = vmatpush.bf16.msra.mxu2 %v2765_v40 }
  0xed   : > { %v621_v15 = vadd.f32 %v620_v14, %v592_v13  ;;  %v2788_v13 = vld [vmem:[%s3679_s3 + $0xe8] sm:$0xff] }
  0xee   : > { %1164 = vmatpush.bf16.msrb.mxu3 %v2788_v13 }
  0xef   : > { %v630_v16 = vmax.f32 %v621_v15, 0.0 }
  0xf0   : > { %1122 = vmatpush.bf16.msra.mxu2 %v2764_v41 }
  0xf1   : > { %663 = vrot.lane.b32.xlu2 %v630_v16, %s2985_s15  ;;  %s378_s15 = scalar_lea.vmem [#allocation7], %s377_s13 }
  0xf2   : > { %s2101_s16 = sshll.u32 %s378_s15, 4  ;;  %s2102_s16 = int_to_ptr.vmem [resolvable:$true] %s2101_s16 }
  0xf4   : > { %1123 = vmatpush.bf16.msra.mxu2 %v2763_v43 }
  0xf8   : > { %1124 = vmatpush.bf16.msra.mxu2 %v2762_v45 }
  0xfc   : > { %1125 = vmatpush.bf16.msra.mxu2 %v2761_v47 }
 0x100   : > { %1126 = vmatpush.bf16.msra.mxu2 %v2760_v49 }
 0x104   : > { %1127 = vmatpush.bf16.msra.mxu2 %v2759_v52 }
 0x108   : > { %1148 = vmatpush.bf16.msrb.mxu2 %v2782_v54 }
 0x10c   : > { %1149 = vmatpush.bf16.msrb.mxu2 %v2781_v59 }
 0x110   : > { %1150 = vmatpush.bf16.msrb.mxu2 %v2780_v61 }
 0x114   : > { %1151 = vmatpush.bf16.msrb.mxu2 %v2779_v2 }
 0x118   : > { %1152 = vmatpush.bf16.msrb.mxu2 %v2778_v5 }
 0x11c   : > { %1153 = vmatpush.bf16.msrb.mxu2 %v2777_v10 }
 0x120   : > { %1154 = vmatpush.bf16.msrb.mxu2 %v2776_v12 }
 0x12b   : > { %v647_v19 = vpop.permute.xlu2 %646 }
 0x133   : > { %v635_v17 = vpop.permute.xlu0 %634 }
 0x134   : > { %638 = vst.msk [vmem:[#allocation2] sm:$0xff] %vm637_vm1, %v635_v17 }
 0x13b   : > { %v641_v18 = vpop.permute.xlu1 %640 }
 0x13c   : > { %644 = vst.msk [vmem:[#allocation2] sm:$0xff] %vm643_vm2, %v641_v18  ;;  %v2775_v18 = vld [vmem:[%s3679_s3 + $0x80] sm:$0xff] }
 0x13d   : > { %650 = vst.msk [vmem:[#allocation2] sm:$0xff] %vm649_vm3, %v647_v19  ;;  %v2787_v19 = vld [vmem:[%s3679_s3 + $0xe0] sm:$0xff]  ;;  %1155 = vmatpush.bf16.msrb.mxu2 %v2775_v18  ;;  %v2797_v18 = vld [vmem:[%s3681_s5 + $0x30] sm:$0xff] }
 0x13e   : > { %1165 = vmatpush.bf16.msrb.mxu3 %v2787_v19  ;;  %v2805_v19 = vld [vmem:[%s3681_s5 + $0x70] sm:$0xff] }
 0x144   : > { %v758_v20 = vld [vmem:[#allocation2 + $0x2] ss:$0 sm:$0xff]  ;;  %v760_v21 = vld [vmem:[#allocation2 + $0x4] ss:$0 sm:$0xff]  ;;  %v762_v22 = vld [vmem:[#allocation2 + $0x6] ss:$0 sm:$0xff] }
 0x145   : > { %759 = vst [vmem:[#allocation3 + $0x10] sm:$0x1] %v758_v20  ;;  %v803_v23 = vld [vmem:[#allocation2 + $0x3] ss:$0 sm:$0xff]  ;;  %700 = vrot.lane.b32.xlu1 %v760_v21, %s2984_s14  ;;  %689 = vrot.lane.b32.xlu2 %v758_v20, %s2984_s14  ;;  %v805_v24 = vld [vmem:[#allocation2 + $0x5] ss:$0 sm:$0xff] }
 0x146   : > { %761 = vst [vmem:[#allocation3 + $0x11] sm:$0x1] %v760_v21  ;;  %v673_v25 = vld [vmem:[#allocation2] ss:$0 sm:$0xff]  ;;  %v807_v26 = vld [vmem:[#allocation2 + $0x7] ss:$0 sm:$0xff] }
 0x147   : > { %763 = vst [vmem:[#allocation3 + $0x12] sm:$0x1] %v762_v22  ;;  %677 = vrot.lane.b32.xlu0 %v673_v25, %s2984_s14  ;;  %v719_v27 = vld [vmem:[#allocation2 + $0x1] ss:$0 sm:$0xff] }
 0x148   : > { %804 = vst [vmem:[#allocation3 + $0x18] sm:$0x1] %v803_v23 }
 0x149   : > { %806 = vst [vmem:[#allocation3 + $0x19] sm:$0x1] %v805_v24 }
 0x14a   : > { %808 = vst [vmem:[#allocation3 + $0x1a] sm:$0x1] %v807_v26 }
 0x14b   : > { %668 = vst [vmem:[#allocation3] sm:$0x1] %v673_v25  ;;  %v664_v30 = vpop.permute.xlu2 %663  ;;  %v2785_v25 = vld [vmem:[%s3679_s3 + $0xd0] sm:$0xff] }
 0x14c   : > { %670 = vst [vmem:[#allocation3 + $0x1] sm:$0x1] %v758_v20 }
 0x14d   : > { %745 = vrot.lane.b32.xlu1 %v805_v24, %s2984_s14  ;;  %734 = vrot.lane.b32.xlu2 %v803_v23, %s2984_s14  ;;  %672 = vst [vmem:[#allocation3 + $0x2] sm:$0x1] %v760_v21 }
 0x14e   : > { %714 = vst [vmem:[#allocation3 + $0x8] sm:$0x1] %v719_v27 }
 0x14f   : > { %723 = vrot.lane.b32.xlu0 %v719_v27, %s2984_s14  ;;  %716 = vst [vmem:[#allocation3 + $0x9] sm:$0x1] %v803_v23 }
 0x150   : > { %718 = vst [vmem:[#allocation3 + $0xa] sm:$0x1] %v805_v24 }
 0x153   : > { %v654_v28 = vpop.permute.xlu0 %653 }
 0x154   : > { %656 = vst.msk [vmem:[#allocation2 + $0x8] sm:$0xff] %vm637_vm1, %v654_v28 }
 0x155   : > { %790 = vrot.lane.b32.xlu1 %v762_v22, %s2984_s14  ;;  %779 = vrot.lane.b32.xlu2 %v760_v21, %s2984_s14 }
 0x157   : > { %768 = vrot.lane.b32.xlu0 %v758_v20, %s2984_s14  ;;  %v2786_v20 = vld [vmem:[%s3679_s3 + $0xd8] sm:$0xff] }
 0x158   : > { %1166 = vmatpush.bf16.msrb.mxu3 %v2786_v20  ;;  %v2814_v20 = vld [vmem:[%s3681_s5 + $0xb8] sm:$0xff] }
 0x15b   : > { %v659_v29 = vpop.permute.xlu1 %658 }
 0x15c   : > { %661 = vst.msk [vmem:[#allocation2 + $0x8] sm:$0xff] %vm643_vm2, %v659_v29  ;;  %1167 = vmatpush.bf16.msrb.mxu3 %v2785_v25  ;;  %v2804_v25 = vld [vmem:[%s3681_s5 + $0x68] sm:$0xff] }
 0x15d   : > { %666 = vst.msk [vmem:[#allocation2 + $0x8] sm:$0xff] %vm649_vm3, %v664_v30  ;;  %824 = vrot.lane.b32.xlu2 %v805_v24, %s2984_s14 }
 0x15f   : > { %813 = vrot.lane.b32.xlu0 %v803_v23, %s2984_s14 }
 0x164   : > { %v797_v31 = vld [vmem:[#allocation2 + $0xa] ss:$0 sm:$0xff]  ;;  %v799_v32 = vld [vmem:[#allocation2 + $0xc] ss:$0 sm:$0xff]  ;;  %v801_v33 = vld [vmem:[#allocation2 + $0xe] ss:$0 sm:$0xff] }
 0x165   : > { %798 = vst [vmem:[#allocation3 + $0x16] sm:$0x1] %v797_v31  ;;  %v842_v34 = vld [vmem:[#allocation2 + $0xb] ss:$0 sm:$0xff]  ;;  %702 = vrot.lane.b32.xlu2 %v799_v32, %s2984_s14  ;;  %v844_v35 = vld [vmem:[#allocation2 + $0xd] ss:$0 sm:$0xff] }
 0x166   : > { %800 = vst [vmem:[#allocation3 + $0x17] sm:$0x1] %v799_v32  ;;  %v674_v36 = vld [vmem:[#allocation2 + $0x8] ss:$0 sm:$0xff]  ;;  %v846_v37 = vld [vmem:[#allocation2 + $0xf] ss:$0 sm:$0xff] }
 0x167   : > { %802 = vst [vmem:[#allocation3 + $0x30] sm:$0x1] %v801_v33  ;;  %679 = vrot.lane.b32.xlu1 %v674_v36, %s2984_s14  ;;  %691 = vrot.lane.b32.xlu0 %v797_v31, %s2984_s14  ;;  %v720_v38 = vld [vmem:[#allocation2 + $0x9] ss:$0 sm:$0xff] }
 0x168   : > { %843 = vst [vmem:[#allocation3 + $0x1e] sm:$0x1] %v842_v34 }
 0x169   : > { %845 = vst [vmem:[#allocation3 + $0x1f] sm:$0x1] %v844_v35 }
 0x16a   : > { %847 = vst [vmem:[#allocation3 + $0x38] sm:$0x1] %v846_v37 }
 0x16b   : > { %708 = vst [vmem:[#allocation3 + $0x6] sm:$0x1] %v674_v36 }
 0x16c   : > { %710 = vst [vmem:[#allocation3 + $0x7] sm:$0x1] %v797_v31 }
 0x16d   : > { %747 = vrot.lane.b32.xlu2 %v844_v35, %s2984_s14  ;;  %712 = vst [vmem:[#allocation3 + $0x20] sm:$0x1] %v799_v32 }
 0x16e   : > { %753 = vst [vmem:[#allocation3 + $0xe] sm:$0x1] %v720_v38  ;;  %v854_v47 = vld [vmem:[#allocation3 + $0x30] sm:$0x1] }
 0x16f   : > { %725 = vrot.lane.b32.xlu1 %v720_v38, %s2984_s14  ;;  %736 = vrot.lane.b32.xlu0 %v842_v34, %s2984_s14  ;;  %755 = vst [vmem:[#allocation3 + $0xf] sm:$0x1] %v842_v34 }
 0x170   : > { %757 = vst [vmem:[#allocation3 + $0x28] sm:$0x1] %v844_v35 }
 0x171   : > { %v855_v53 = vld [vmem:[#allocation3 + $0x38] sm:$0x1] }
 0x175   : > { %792 = vrot.lane.b32.xlu2 %v801_v33, %s2984_s14  ;;  %v852_v33 = vld [vmem:[#allocation3 + $0x20] sm:$0x1] }
 0x177   : > { %770 = vrot.lane.b32.xlu1 %v797_v31, %s2984_s14  ;;  %781 = vrot.lane.b32.xlu0 %v799_v32, %s2984_s14  ;;  %v2783_v31 = vld [vmem:[%s3679_s3 + $0xc0] sm:$0xff] }
 0x178   : > { %v853_v40 = vld [vmem:[#allocation3 + $0x28] sm:$0x1] }
 0x17d   : > { %837 = vrot.lane.b32.xlu2 %v846_v37, %s2984_s14 }
 0x17f   : > { %815 = vrot.lane.b32.xlu1 %v842_v34, %s2984_s14  ;;  %826 = vrot.lane.b32.xlu0 %v844_v35, %s2984_s14 }
 0x187   : > { %835 = vrot.lane.b32.xlu1 %v807_v26, %s2984_s14  ;;  %v2784_v26 = vld [vmem:[%s3679_s3 + $0xc8] sm:$0xff] }
 0x188   : > { %1168 = vmatpush.bf16.msrb.mxu3 %v2784_v26  ;;  %v2812_v26 = vld [vmem:[%s3681_s5 + $0xa8] sm:$0xff] }
 0x18c   : > { %1169 = vmatpush.bf16.msrb.mxu3 %v2783_v31  ;;  %v2819_v31 = vld [vmem:[%s3681_s5 + $0xe0] sm:$0xff] }
 0x19f   : > { %v3211_v42 = vpop.permute.xlu2 %689 }
 0x1a7   : > { %v3222_v46 = vpop.permute.xlu2 %734 }
 0x1af   : > { %v3236_v51 = vpop.permute.xlu2 %779 }
 0x1b7   : > { %v3250_v56 = vpop.permute.xlu2 %824  ;;  %v701_v58 = vpop.permute.xlu1 %700 }
 0x1b9   : > { %v678_v57 = vpop.permute.xlu0 %677 }
 0x1bf   : > { %v703_v63 = vpop.permute.xlu2 %702  ;;  %v746_v3 = vpop.permute.xlu1 %745 }
 0x1c0   : > { %v704_v0 = vsel %vm681_vm4, %v701_v58, %v703_v63 }
 0x1c1   : > { %706 = vst [vmem:[#allocation3 + $0x5] sm:$0x1] %v704_v0  ;;  %v724_v1 = vpop.permute.xlu0 %723 }
 0x1c7   : > { %v748_v7 = vpop.permute.xlu2 %747  ;;  %v791_v14 = vpop.permute.xlu1 %790 }
 0x1c8   : > { %v749_v8 = vsel %vm681_vm4, %v746_v3, %v748_v7 }
 0x1c9   : > { %751 = vst [vmem:[#allocation3 + $0xd] sm:$0x1] %v749_v8  ;;  %v769_v9 = vpop.permute.xlu0 %768 }
 0x1cf   : > { %v793_v15 = vpop.permute.xlu2 %792 }
 0x1d0   : > { %v794_v16 = vsel %vm681_vm4, %v791_v14, %v793_v15 }
 0x1d1   : > { %796 = vst [vmem:[#allocation3 + $0x15] sm:$0x1] %v794_v16  ;;  %v814_v17 = vpop.permute.xlu0 %813  ;;  %v2798_v16 = vld [vmem:[%s3681_s5 + $0x38] sm:$0xff] }
 0x1d2   : > { %1540 = vmatpush.bf16.msrb.mxu0 %v2798_v16 }
 0x1d6   : > { %1541 = vmatpush.bf16.msrb.mxu0 %v2797_v18  ;;  %v2835_v18 = vld [vmem:[%s3683_s7 + $0x44] sm:$0xf] }
 0x1d7   : > { %v838_v49 = vpop.permute.xlu2 %837 }
 0x1d9   : > { %v680_v21 = vpop.permute.xlu1 %679  ;;  %v692_v22 = vpop.permute.xlu0 %691 }
 0x1da   : > { %v682_v23 = vsel %vm681_vm4, %v678_v57, %v680_v21  ;;  %v693_v24 = vsel %vm681_vm4, %v3211_v42, %v692_v22  ;;  %v2822_v21 = vld [vmem:[%s3681_s5 + $0xf8] sm:$0xff]  ;;  %v2813_v22 = vld [vmem:[%s3681_s5 + $0xb0] sm:$0xff] }
 0x1db   : > { %684 = vst [vmem:[#allocation3 + $0x3] sm:$0x1] %v682_v23  ;;  %v2821_v23 = vld [vmem:[%s3681_s5 + $0xf0] sm:$0xff] }
 0x1dc   : > { %695 = vst [vmem:[#allocation3 + $0x4] sm:$0x1] %v693_v24  ;;  %v2796_v24 = vld [vmem:[%s3681_s5 + $0x28] sm:$0xff] }
 0x1dd   : > { %1542 = vmatpush.bf16.msrb.mxu0 %v2796_v24  ;;  %v2570_v24 = vld [vmem:[%s3683_s7 + $0x40] sm:$0xf] }
 0x1e1   : > { %v726_v27 = vpop.permute.xlu1 %725  ;;  %v737_v28 = vpop.permute.xlu0 %736 }
 0x1e2   : > { %v727_v29 = vsel %vm681_vm4, %v724_v1, %v726_v27  ;;  %v738_v30 = vsel %vm681_vm4, %v3222_v46, %v737_v28  ;;  %v2820_v27 = vld [vmem:[%s3681_s5 + $0xe8] sm:$0xff]  ;;  %v2795_v28 = vld [vmem:[%s3681_s5 + $0x20] sm:$0xff] }
 0x1e3   : > { %729 = vst [vmem:[#allocation3 + $0xb] sm:$0x1] %v727_v29  ;;  %v848_v32 = vld [vmem:[#allocation3] sm:$0xff]  ;;  %v2803_v29 = vld [vmem:[%s3681_s5 + $0x60] sm:$0xff]  ;;  %1543 = vmatpush.bf16.msrb.mxu0 %v2795_v28 }
 0x1e4   : > { %740 = vst [vmem:[#allocation3 + $0xc] sm:$0x1] %v738_v30  ;;  %v856_v34 = vpack.c.bf16 %v852_v33, %v848_v32  ;;  %v2811_v30 = vld [vmem:[%s3681_s5 + $0xa0] sm:$0xff]  ;;  %v2794_v32 = vld [vmem:[%s3681_s5 + $0x18] sm:$0xff] }
 0x1e5   : > { %v2802_v33 = vld [vmem:[%s3681_s5 + $0x58] sm:$0xff] }
 0x1e6   : > { %1128 = vmatmul.bf16.vlgmr.msra.gmra.mxu2 %v856_v34  ;;  %v2793_v34 = vld [vmem:[%s3681_s5 + $0x10] sm:$0xff]  ;;  %v2580_v28 = vld [vmem:[%s3683_s7 + $0x58] sm:$0xf0] }
 0x1e7   : > { %1566 = vmatpush.bf16.msra.mxu2 %v2814_v20  ;;  %1544 = vmatpush.bf16.msrb.mxu0 %v2794_v32  ;;  %v2556_v32 = vld [vmem:[%s3683_s7 + $0x30] sm:$0xf0] }
 0x1e9   : > { %v771_v35 = vpop.permute.xlu1 %770  ;;  %v782_v36 = vpop.permute.xlu0 %781 }
 0x1ea   : > { %v772_v37 = vsel %vm681_vm4, %v769_v9, %v771_v35  ;;  %v783_v38 = vsel %vm681_vm4, %v3236_v51, %v782_v36  ;;  %v2792_v35 = vld [vmem:[%s3681_s5 + $0x8] sm:$0xff] }
 0x1eb   : > { %774 = vst [vmem:[#allocation3 + $0x13] sm:$0x1] %v772_v37  ;;  %v849_v39 = vld [vmem:[#allocation3 + $0x8] sm:$0xff]  ;;  %1567 = vmatpush.bf16.msra.mxu2 %v2813_v22  ;;  %1545 = vmatpush.bf16.msrb.mxu0 %v2793_v34  ;;  %v1211_v37 = vlaneseq  ;;  %v2578_v22 = vld [vmem:[%s3683_s7 + $0x48] sm:$0xf] }
 0x1ec   : > { %785 = vst [vmem:[#allocation3 + $0x14] sm:$0x1] %v783_v38  ;;  %v857_v41 = vpack.c.bf16 %v853_v40, %v849_v39 }
 0x1ed   : > { %vm1213_vm10 = vcmp.lt.s32.totalorder %v1211_v37, 192  ;;  %vm1224_vm11 = vcmp.ge.s32.totalorder %v1211_v37, 64  ;;  %vm1225_vm12 = vcmp.lt.s32.totalorder %v1211_v37, 256  ;;  %v2833_v37 = vld [vmem:[%s3683_s7 + $0x2c] sm:$0xf0] }
 0x1ee   : > { %1142 = vmatmul.bf16.vlgmr.msra.gmra.mxu3 %v857_v41  ;;  %v2810_v41 = vld [vmem:[%s3681_s5 + $0x98] sm:$0xff]  ;;  %vm1226_vm13 = vmand %vm1224_vm11, %vm1225_vm12 }
 0x1ef   : > { %1579 = vmatpush.bf16.msra.mxu3 %v2822_v21  ;;  %1568 = vmatpush.bf16.msra.mxu2 %v2812_v26  ;;  %v2837_v26 = vld [vmem:[%s3683_s7 + $0x4c] sm:$0xf0] }
 0x1f0   : > { %1546 = vmatpush.bf16.msrb.mxu0 %v2792_v35  ;;  %v2834_v35 = vld [vmem:[%s3683_s7 + $0x34] sm:$0xf0] }
 0x1f1   : > { %v816_v42 = vpop.permute.xlu1 %815  ;;  %v827_v43 = vpop.permute.xlu0 %826 }
 0x1f2   : > { %v817_v44 = vsel %vm681_vm4, %v814_v17, %v816_v42  ;;  %v828_v45 = vsel %vm681_vm4, %v3250_v56, %v827_v43  ;;  %v2918_v56 = vld [vmem:[%s3680_s4] ss:$0 sm:$0xff]  ;;  %v2806_v17 = vld [vmem:[%s3681_s5 + $0x78] sm:$0xff]  ;;  %v2801_v43 = vld [vmem:[%s3681_s5 + $0x50] sm:$0xff] }
 0x1f3   : > { %819 = vst [vmem:[#allocation3 + $0x1b] sm:$0x1] %v817_v44  ;;  %v850_v46 = vld [vmem:[#allocation3 + $0x10] sm:$0xff]  ;;  %1553 = vmatpush.bf16.msrb.mxu1 %v2806_v17  ;;  %1580 = vmatpush.bf16.msra.mxu3 %v2821_v23  ;;  %v2818_v42 = vld [vmem:[%s3681_s5 + $0xd8] sm:$0xff]  ;;  %v2791_v44 = vld [vmem:[%s3681_s5] sm:$0xff] }
 0x1f4   : > { %830 = vst [vmem:[#allocation3 + $0x1c] sm:$0x1] %v828_v45  ;;  %v858_v48 = vpack.c.bf16 %v854_v47, %v850_v46  ;;  %1569 = vmatpush.bf16.msra.mxu2 %v2811_v30  ;;  %v2809_v45 = vld [vmem:[%s3681_s5 + $0x90] sm:$0xff]  ;;  %1547 = vmatpush.bf16.msrb.mxu0 %v2791_v44  ;;  %v2800_v47 = vld [vmem:[%s3681_s5 + $0x48] sm:$0xff]  ;;  %v2596_v17 = vld [vmem:[%s3683_s7 + $0x78] sm:$0xf0] }
 0x1f5   : > { %v2817_v46 = vld [vmem:[%s3681_s5 + $0xd0] sm:$0xff]  ;;  %v2838_v23 = vld [vmem:[%s3683_s7 + $0x54] sm:$0xf0]  ;;  %v2546_v44 = vld [vmem:[%s3683_s7 + $0x8] sm:$0xf] }
 0x1f6   : > { %1156 = vmatmul.bf16.vlgmr.msrb.gmra.mxu2 %v858_v48  ;;  %v2808_v48 = vld [vmem:[%s3681_s5 + $0x88] sm:$0xff] }
 0x1f7   : > { %1554 = vmatpush.bf16.msrb.mxu1 %v2805_v19  ;;  %1581 = vmatpush.bf16.msra.mxu3 %v2820_v27  ;;  %v2572_v19 = vld [vmem:[%s3683_s7 + $0x50] sm:$0xf0]  ;;  %v2836_v27 = vld [vmem:[%s3683_s7 + $0x4c] sm:$0xf] }
 0x1f8   : > { %1570 = vmatpush.bf16.msra.mxu2 %v2810_v41  ;;  %v2575_v21 = vor.u32 %v2835_v18, %v2572_v19  ;;  %v2583_v30 = vor.u32 %v2836_v27, %v2580_v28  ;;  %v2827_v41 = vld [vmem:[%s3683_s7 + $0x4] sm:$0xf]  ;;  %v2845_v27 = vld [vmem:[%s3685_s9 + $0x10] sm:$0xff] }
 0x1f9   : > { %v836_v50 = vpop.permute.xlu1 %835  ;;  %v2869_v28 = vld [vmem:[%s3685_s9 + $0xd0] sm:$0xff] }
 0x1fa   : > { %v839_v51 = vsel %vm681_vm4, %v836_v50, %v838_v49  ;;  %v2816_v49 = vld [vmem:[%s3681_s5 + $0xc8] sm:$0xff]  ;;  %v2799_v50 = vld [vmem:[%s3681_s5 + $0x40] sm:$0xff] }
 0x1fb   : > { %841 = vst [vmem:[#allocation3 + $0x1d] sm:$0x1] %v839_v51  ;;  %1555 = vmatpush.bf16.msrb.mxu1 %v2804_v25  ;;  %1582 = vmatpush.bf16.msra.mxu3 %v2819_v31  ;;  %v2807_v51 = vld [vmem:[%s3681_s5 + $0x80] sm:$0xff]  ;;  %v2579_v25 = vor.u32 %v2838_v23, %v2578_v22 }
 0x1fc   : > { %1571 = vmatpush.bf16.msra.mxu2 %v2809_v45  ;;  %v2831_v31 = vld [vmem:[%s3683_s7 + $0x24] sm:$0xf]  ;;  %v2830_v45 = vld [vmem:[%s3683_s7 + $0x14] sm:$0xf0] }
 0x1fd   : > { %v2559_v34 = vor.u32 %v2831_v31, %v2556_v32  ;;  %v2844_v32 = vld [vmem:[%s3685_s9 + $0x8] sm:$0xff] }
 0x1ff   : > { %1556 = vmatpush.bf16.msrb.mxu1 %v2803_v29  ;;  %1583 = vmatpush.bf16.msra.mxu3 %v2818_v42  ;;  %v2571_v29 = vor.u32 %v2837_v26, %v2570_v24  ;;  %v2846_v24 = vld [vmem:[%s3685_s9 + $0x18] sm:$0xff] }
 0x200   : > { %1572 = vmatpush.bf16.msra.mxu2 %v2808_v48  ;;  %v2538_v48 = vld [vmem:[%s3683_s7] sm:$0xf] }
 0x202   : > { %v851_v52 = vld [vmem:[#allocation3 + $0x18] sm:$0xff] }
 0x203   : > { %v859_v54 = vpack.c.bf16 %v855_v53, %v851_v52  ;;  %1557 = vmatpush.bf16.msrb.mxu1 %v2802_v33  ;;  %1584 = vmatpush.bf16.msra.mxu3 %v2817_v46  ;;  %v2815_v52 = vld [vmem:[%s3681_s5 + $0xc0] sm:$0xff]  ;;  %v2826_v53 = vld [vmem:[%s3681_s5 + $0x118] sm:$0xff]  ;;  %v2562_v33 = vld [vmem:[%s3683_s7 + $0x28] sm:$0xf] }
 0x204   : > { %1573 = vmatpush.bf16.msra.mxu2 %v2807_v51  ;;  %1596 = vmatpush.bf16.msra.mxu0 %v2826_v53  ;;  %v2828_v51 = vld [vmem:[%s3683_s7 + $0xc] sm:$0xf] }
 0x205   : > { %1170 = vmatmul.bf16.vlgmr.msrb.gmra.mxu3 %v859_v54  ;;  %v2825_v54 = vld [vmem:[%s3681_s5 + $0x110] sm:$0xff] }
 0x207   : > { %1558 = vmatpush.bf16.msrb.mxu1 %v2801_v43  ;;  %1585 = vmatpush.bf16.msra.mxu3 %v2816_v49  ;;  %v2540_v43 = vld [vmem:[%s3683_s7 + $0x10] sm:$0xf0]  ;;  %v2829_v49 = vld [vmem:[%s3683_s7 + $0xc] sm:$0xf0] }
 0x208   : > { %1597 = vmatpush.bf16.msra.mxu0 %v2825_v54 }
 0x20b   : > { %1559 = vmatpush.bf16.msrb.mxu1 %v2800_v47  ;;  %1586 = vmatpush.bf16.msra.mxu3 %v2815_v52  ;;  %v2543_v47 = vor.u32 %v2827_v41, %v2540_v43  ;;  %v2548_v52 = vld [vmem:[%s3683_s7 + $0x18] sm:$0xf0]  ;;  %v2859_v41 = vld [vmem:[%s3685_s9 + $0x80] sm:$0xff] }
 0x20f   : > { %1560 = vmatpush.bf16.msrb.mxu1 %v2799_v50  ;;  %v2547_v50 = vor.u32 %v2830_v45, %v2546_v44 }
 0x269   : > { %v1129_v55 = vpop.f32.mrf.mxu2 }
 0x26a   : > { %v1130_v61 = vadd.f32 %v2918_v56, %v1129_v55  ;;  %v2824_v55 = vld [vmem:[%s3681_s5 + $0x108] sm:$0xff] }
 0x26b   : > { %1598 = vmatpush.bf16.msra.mxu0 %v2824_v55  ;;  %v2539_v55 = vor.u32 %v2829_v49, %v2538_v48 }
 0x271   : > { %v1143_v57 = vpop.f32.mrf.mxu3  ;;  %v1131_v58 = vpop.f32.mrf.mxu2 }
 0x272   : > { %v1144_v62 = vadd.f32 %v1143_v57, %v1130_v61  ;;  %v1132_v2 = vadd.f32 %v2918_v56, %v1131_v58  ;;  %v2823_v57 = vld [vmem:[%s3681_s5 + $0x100] sm:$0xff] }
 0x273   : > { %1599 = vmatpush.bf16.msra.mxu0 %v2823_v57  ;;  %v2551_v57 = vor.u32 %v2828_v51, %v2548_v52 }
 0x279   : > { %v1145_v59 = vpop.f32.mrf.mxu3  ;;  %v1157_v60 = vpop.f32.mrf.mxu2 }
 0x27a   : > { %v1158_v63 = vadd.f32 %v1157_v60, %v1144_v62  ;;  %v1146_v5 = vadd.f32 %v1145_v59, %v1132_v2 }
 0x281   : > { %v1159_v4 = vpop.f32.mrf.mxu2 }
 0x282   : > { %v1160_v7 = vadd.f32 %v1159_v4, %v1146_v5 }
 0x288   : > { %v1171_v0 = vpop.f32.mrf.mxu3 }
 0x289   : > { %v1172_v1 = vadd.f32 %v1171_v0, %v1158_v63 }
 0x28b   : > { %v1176_v3 = vmax.f32 %v1172_v1, 0.0 }
 0x28d   : > { %1195 = vst.sshfl [vmem:[#allocation1] sm:$0xff pattern:$0x75316420] %v1176_v3  ;;  %v2388_v6 = vrot.slane %v1176_v3, 11 }
 0x28e   : > { %1179 = vst.msk [vmem:[#allocation4] sm:$0x7] %vm1178_vm5, %v1176_v3 }
 0x28f   : > { %1189 = vrot.lane.b32.xlu0 %v2388_v6, %s2984_s14 }
 0x290   : > { %v1173_v8 = vpop.f32.mrf.mxu3 }
 0x291   : > { %v1174_v9 = vadd.f32 %v1173_v8, %v1160_v7  ;;  %v2839_v7 = vld [vmem:[%s3683_s7 + $0x64] sm:$0xf]  ;;  %v2588_v8 = vld [vmem:[%s3683_s7 + $0x70] sm:$0xf0] }
 0x293   : > { %v1177_v10 = vmax.f32 %v1174_v9, 0.0  ;;  %v2594_v9 = vld [vmem:[%s3683_s7 + $0x68] sm:$0xf] }
 0x294   : > { %v1198_v11 = vld [vmem:[#allocation1 + $0x1] ss:$2 sm:$0xff] }
 0x295   : > { %1196 = vst.sshfl [vmem:[#allocation1 + $0x10] sm:$0xff pattern:$0x75316420] %v1177_v10  ;;  %v2390_v13 = vrot.slane %v1198_v11, 10  ;;  %v2591_v10 = vor.u32 %v2839_v7, %v2588_v8  ;;  %v2842_v11 = vld [vmem:[%s3683_s7 + $0x74] sm:$0xf0] }
 0x297   : > { %1736 = vmatpush.bf16.msrb.mxu2 %v2591_v10  ;;  %v2848_v10 = vld [vmem:[%s3685_s9 + $0x28] sm:$0xff] }
 0x29b   : > { %1737 = vmatpush.bf16.msrb.mxu2 %v2575_v21  ;;  %v2862_v21 = vld [vmem:[%s3685_s9 + $0x98] sm:$0xff] }
 0x29c   : > { %v1200_v12 = vld [vmem:[#allocation1 + $0x10] ss:$2 sm:$0xff] }
 0x29d   : > { %v1206_v14 = vrot.slane %v1200_v12, 6  ;;  %v2595_v12 = vor.u32 %v2842_v11, %v2594_v9  ;;  %v2872_v11 = vld [vmem:[%s3685_s9 + $0xe8] sm:$0xff] }
 0x29f   : > { %v1207_v15 = vsel %vm1203_vm8, %v2390_v13, %v1206_v14  ;;  %1749 = vmatpush.bf16.msrb.mxu3 %v2595_v12  ;;  %v2586_v13 = vld [vmem:[%s3683_s7 + $0x60] sm:$0xf]  ;;  %v2841_v14 = vld [vmem:[%s3683_s7 + $0x6c] sm:$0xf0]  ;;  %1738 = vmatpush.bf16.msrb.mxu2 %v2559_v34 }
 0x2a0   : > { %1209 = vst.msk [vmem:[#allocation4 + $0x4] sm:$0x7] %vm1178_vm5, %v1207_v15  ;;  %v2840_v15 = vld [vmem:[%s3683_s7 + $0x6c] sm:$0xf]  ;;  %v2587_v16 = vor.u32 %v2841_v14, %v2586_v13  ;;  %v2855_v13 = vld [vmem:[%s3685_s9 + $0x60] sm:$0xff]  ;;  %v2853_v34 = vld [vmem:[%s3685_s9 + $0x50] sm:$0xff] }
 0x2a1   : > { %v2599_v20 = vor.u32 %v2840_v15, %v2596_v17  ;;  %v2863_v14 = vld [vmem:[%s3685_s9 + $0xa0] sm:$0xff] }
 0x2a2   : > { %1723 = vmatpush.bf16.msra.mxu1 %v2587_v16  ;;  %v2847_v15 = vld [vmem:[%s3685_s9 + $0x20] sm:$0xff] }
 0x2a3   : > { %1750 = vmatpush.bf16.msrb.mxu3 %v2579_v25  ;;  %1739 = vmatpush.bf16.msrb.mxu2 %v2543_v47  ;;  %v2871_v16 = vld [vmem:[%s3685_s9 + $0xe0] sm:$0xff]  ;;  %v2870_v25 = vld [vmem:[%s3685_s9 + $0xd8] sm:$0xff] }
 0x2a6   : > { %1724 = vmatpush.bf16.msra.mxu1 %v2571_v29 }
 0x301   : > { %v1190_v36 = vpop.permute.xlu0 %1189 }
 0x302   : > { %1193 = vst.msk [vmem:[#allocation4] sm:$0x7] %vm1192_vm9, %v1190_v36  ;;  %v2554_v36 = vld [vmem:[%s3683_s7 + $0x20] sm:$0xf] }
 0x303   : > { %v2555_v42 = vor.u32 %v2833_v37, %v2554_v36  ;;  %v2843_v36 = vld [vmem:[%s3685_s9] sm:$0xff] }
 0x304   : > { %v2867_v37 = vld [vmem:[%s3685_s9 + $0xc0] sm:$0xff] }
 0x305   : > { %1725 = vmatpush.bf16.msra.mxu1 %v2555_v42  ;;  %v1626_v42 = vld [vmem:[%s3684_s8] sm:$0xf] }
 0x306   : > { %v1708_v43 = vperm.slane %v1626_v42, 0  ;;  %v1711_v44 = vperm.slane %v1626_v42, 3  ;;  %v1710_v52 = vperm.slane %v1626_v42, 2 }
 0x309   : > { %v1217_v38 = vld [vmem:[#allocation4 + $0x1] ss:$4 sm:$0x3]  ;;  %v1229_v39 = vld [vmem:[#allocation4 + $0x2] ss:$4 sm:$0x3]  ;;  %1726 = vmatpush.bf16.msra.mxu1 %v2539_v55 }
 0x30a   : > { %1219 = vrot.lane.b32.xlu1 %v1217_v38, %s2984_s14  ;;  %1230 = vst.msk [vmem:[#allocation5 + $0x3] sm:$0x3] %vm1213_vm10, %v1229_v39  ;;  %v1210_v40 = vld [vmem:[#allocation4] ss:$4 sm:$0x3]  ;;  %v2563_v38 = vor.u32 %v2834_v35, %v2562_v33  ;;  %v2868_v33 = vld [vmem:[%s3685_s9 + $0xc8] sm:$0xff] }
 0x30b   : > { %1215 = vst.msk [vmem:[#allocation5] sm:$0x3] %vm1213_vm10, %v1210_v40  ;;  %v2832_v39 = vld [vmem:[%s3683_s7 + $0x2c] sm:$0xf]  ;;  %v2564_v40 = vld [vmem:[%s3683_s7 + $0x38] sm:$0xf0] }
 0x30c   : > { %v2567_v46 = vor.u32 %v2832_v39, %v2564_v40  ;;  %1751 = vmatpush.bf16.msrb.mxu3 %v2563_v38  ;;  %v2861_v35 = vld [vmem:[%s3685_s9 + $0x90] sm:$0xff]  ;;  %v2852_v38 = vld [vmem:[%s3685_s9 + $0x48] sm:$0xff]  ;;  %v2851_v40 = vld [vmem:[%s3685_s9 + $0x40] sm:$0xff]  ;;  %s2939_s14 = scalar_lea.hbm %s3687_s11, 2 }
 0x30d   : > { %v2860_v39 = vld [vmem:[%s3685_s9 + $0x88] sm:$0xff]  ;;  %p2941_p1 = scmp.lt.s32.totalorder %s2939_s14, %s2935_s30 }
 0x30f   : > { %p2942_p2 = por %p2941_p1, %p2940_p0 }
 0x310   : > { %1752 = vmatpush.bf16.msrb.mxu3 %v2547_v50  ;;  %v1709_v50 = vperm.slane %v1626_v42, 1 }
 0x311   : > { %p2943_p3 = pnand %p2942_p2, %p2938_p13 }
 0x37c   : > { %v1220_v58 = vpop.permute.xlu1 %1219 }
 0x37d   : > { %v1221_v56 = vrot.slane %v1220_v58, 7 }
 0x37f   : > { %v1222_v59 = vsel %vm681_vm4, %v1221_v56, %v1220_v58  ;;  %v2850_v58 = vld [vmem:[%s3685_s9 + $0x38] sm:$0xff] }
 0x380   : > { %1227 = vst.msk [vmem:[#allocation5 + $0x1] sm:$0x3] %vm1226_vm13, %v1222_v59  ;;  %v2858_v56 = vld [vmem:[%s3685_s9 + $0x78] sm:$0xff] }
 0x381   : > { %v2866_v59 = vld [vmem:[%s3685_s9 + $0xb8] sm:$0xff] }
 0x387   : > { %v1231_v60 = vld [vmem:[#allocation5] sm:$0x1f] }
 0x388   : > { %v1233_v61 = vperm.slane %v1231_v60, 0  ;;  %v1234_v62 = vperm.slane %v1231_v60, 1  ;;  %v1235_v63 = vperm.slane %v1231_v60, 2  ;;  %v1236_v0 = vperm.slane %v1231_v60, 3 }
 0x389   : > { %v1237_v5 = vperm.slane %v1231_v60, 4  ;;  %v1320_v60 = vld [vmem:[%s3682_s6] sm:$0x1] }
 0x38a   : > { %v1243_v1 = vpack.c.bf16 %v1233_v61, %v1233_v61  ;;  %v1244_v2 = vpack.c.bf16 %v1234_v62, %v1234_v62  ;;  %v1245_v3 = vpack.c.bf16 %v1235_v63, %v1235_v63  ;;  %v1246_v4 = vpack.c.bf16 %v1236_v0, %v1236_v0  ;;  %v2874_v61 = vld [vmem:[%s3685_s9 + $0xf8] sm:$0xff]  ;;  %v2857_v62 = vld [vmem:[%s3685_s9 + $0x70] sm:$0xff] }
 0x38b   : > { %v1247_v6 = vpack.c.bf16 %v1237_v5, %v1237_v5  ;;  %v2865_v63 = vld [vmem:[%s3685_s9 + $0xb0] sm:$0xff]  ;;  %v2856_v5 = vld [vmem:[%s3685_s9 + $0x68] sm:$0xff] }
 0x38c   : > { %1548 = vmatmul.bf16.vlgmr.msrb.gmra.mxu0 %v1243_v1  ;;  %1561 = vmatmul.bf16.vlgmr.msrb.gmra.mxu1 %v1244_v2  ;;  %v2849_v1 = vld [vmem:[%s3685_s9 + $0x30] sm:$0xff] }
 0x38d   : > { %1574 = vmatmul.bf16.vlgmr.msra.gmra.mxu2 %v1245_v3  ;;  %1587 = vmatmul.bf16.vlgmr.msra.gmra.mxu3 %v1246_v4  ;;  %v2873_v2 = vld [vmem:[%s3685_s9 + $0xf0] sm:$0xff] }
 0x38e   : > { %1762 = vmatpush.bf16.msrb.mxu0 %v2599_v20  ;;  %2049 = vmatpush.bf16.msra.mxu2 %v2858_v56  ;;  %v2854_v20 = vld [vmem:[%s3685_s9 + $0x58] sm:$0xff] }
 0x38f   : > { %2062 = vmatpush.bf16.msra.mxu3 %v2866_v59  ;;  %2036 = vmatpush.bf16.msrb.mxu1 %v2850_v58 }
 0x392   : > { %1763 = vmatpush.bf16.msrb.mxu0 %v2583_v30  ;;  %2050 = vmatpush.bf16.msra.mxu2 %v2857_v62 }
 0x393   : > { %2063 = vmatpush.bf16.msra.mxu3 %v2865_v63  ;;  %2037 = vmatpush.bf16.msrb.mxu1 %v2849_v1 }
 0x396   : > { %1764 = vmatpush.bf16.msrb.mxu0 %v2567_v46  ;;  %2051 = vmatpush.bf16.msra.mxu2 %v2856_v5  ;;  %v1843_v5 = vld [vmem:[%s3686_s10] sm:$0x1] }
 0x397   : > { %2038 = vmatpush.bf16.msrb.mxu1 %v2848_v10 }
 0x39a   : > { %1765 = vmatpush.bf16.msrb.mxu0 %v2551_v57  ;;  %2052 = vmatpush.bf16.msra.mxu2 %v2855_v13 }
 0x39b   : > { %2039 = vmatpush.bf16.msrb.mxu1 %v2847_v15 }
 0x39c   : > { %2535 = vmatmul.msk.bf16.vlgmr.msra.gmra.mxu0 %vm681_vm4, %v1247_v6  ;;  %v2864_v6 = vld [vmem:[%s3685_s9 + $0xa8] sm:$0xff] }
 0x39d   : > { %2064 = vmatpush.bf16.msra.mxu3 %v2864_v6 }
 0x39e   : > { %2075 = vmatpush.bf16.msra.mxu0 %v2874_v61  ;;  %2053 = vmatpush.bf16.msra.mxu2 %v2854_v20 }
 0x39f   : > { %2040 = vmatpush.bf16.msrb.mxu1 %v2846_v24 }
 0x3a1   : > { %2065 = vmatpush.bf16.msra.mxu3 %v2863_v14 }
 0x3a2   : > { %2076 = vmatpush.bf16.msra.mxu0 %v2873_v2  ;;  %2054 = vmatpush.bf16.msra.mxu2 %v2853_v34 }
 0x3a3   : > { %2041 = vmatpush.bf16.msrb.mxu1 %v2845_v27 }
 0x3a5   : > { %2066 = vmatpush.bf16.msra.mxu3 %v2862_v21 }
 0x3a6   : > { %2077 = vmatpush.bf16.msra.mxu0 %v2872_v11  ;;  %2055 = vmatpush.bf16.msra.mxu2 %v2852_v38 }
 0x3a7   : > { %2042 = vmatpush.bf16.msrb.mxu1 %v2844_v32 }
 0x3a9   : > { %2067 = vmatpush.bf16.msra.mxu3 %v2861_v35 }
 0x3aa   : > { %2078 = vmatpush.bf16.msra.mxu0 %v2871_v16  ;;  %2056 = vmatpush.bf16.msra.mxu2 %v2851_v40 }
 0x3ab   : > { %2043 = vmatpush.bf16.msrb.mxu1 %v2843_v36 }
 0x3ad   : > { %2068 = vmatpush.bf16.msra.mxu3 %v2860_v39 }
 0x3ae   : > { %2079 = vmatpush.bf16.msra.mxu0 %v2870_v25 }
 0x3b1   : > { %2069 = vmatpush.bf16.msra.mxu3 %v2859_v41 }
 0x3b2   : > { %2080 = vmatpush.bf16.msra.mxu0 %v2869_v28 }
 0x3b6   : > { %2081 = vmatpush.bf16.msra.mxu0 %v2868_v33 }
 0x3ba   : > { %2082 = vmatpush.bf16.msra.mxu0 %v2867_v37 }
 0x409   : > { %v1549_v53 = vpop.f32.mrf.mxu0  ;;  %v1562_v54 = vpop.f32.mrf.mxu1 }
 0x40a   : > { %v1550_v0 = vadd.f32 %v1549_v53, %v1320_v60 }
 0x40c   : > { %v1563_v9 = vadd.f32 %v1562_v54, %v1550_v0 }
 0x410   : > { %v1575_v3 = vpop.f32.mrf.mxu2  ;;  %v1588_v4 = vpop.f32.mrf.mxu3 }
 0x411   : > { %v1551_v7 = vpop.f32.mrf.mxu0  ;;  %v1564_v8 = vpop.f32.mrf.mxu1  ;;  %v1576_v12 = vadd.f32 %v1575_v3, %v1563_v9 }
 0x413   : > { %v1589_v17 = vadd.f32 %v1588_v4, %v1576_v12 }
 0x418   : > { %v1577_v18 = vpop.f32.mrf.mxu2  ;;  %v1590_v19 = vpop.f32.mrf.mxu3 }
 0x419   : > { %v1601_v22 = vpop.f32.mrf.mxu0 }
 0x41a   : > { %v1602_v23 = vadd.f32 %v1601_v22, %v1589_v17 }
 0x41c   : > { %v1605_v26 = vmax.f32 %v1602_v23, 0.0 }
 0x41e   : > { %1607 = vst.msk [vmem:[#allocation6] sm:$0x1] %vm1606_vm14, %v1605_v26 }
 0x421   : > { %v1603_v29 = vpop.f32.mrf.mxu0 }
 0x425   : > { %v1608_v30 = vld [vmem:[#allocation6] sm:$0x1] }
 0x426   : > { %v1609_v31 = vpack.c.bf16 %v1608_v30, %v1608_v30 }
 0x428   : > { %2600 = vmatmul.msk.bf16.vlgmr.msra.gmra.mxu1 %vm681_vm4, %v1609_v31  ;;  %2601 = vmatmul.msk.bf16.vlgmr.msrb.gmra.mxu2 %vm681_vm4, %v1609_v31 }
 0x429   : > { %2602 = vmatmul.msk.bf16.vlgmr.msrb.gmra.mxu3 %vm681_vm4, %v1609_v31  ;;  %2603 = vmatmul.msk.bf16.vlgmr.msrb.gmra.mxu0 %vm681_vm4, %v1609_v31 }
 0x4a5   : > { %v1728_v45 = vpop.f32.mrf.mxu1 }
 0x4a6   : > { %v1729_v46 = vadd.f32 %v1728_v45, %v1708_v43  ;;  %v1767_v47 = vpop.f32.mrf.mxu0 }
 0x4a7   : > { %v1768_v48 = vadd.f32 %v1767_v47, %v1711_v44 }
 0x4a8   : > { %v1771_v49 = vmax.f32 %v1729_v46, 0.0 }
 0x4a9   : > { %v1774_v51 = vmax.f32 %v1768_v48, 0.0 }
 0x4aa   : > { %v1775_v53 = vpack.c.bf16 %v1771_v49, %v1771_v49 }
 0x4ab   : > { %v1778_v54 = vpack.c.bf16 %v1774_v51, %v1774_v51  ;;  %v1741_v55 = vpop.f32.mrf.mxu2 }
 0x4ac   : > { %v1742_v57 = vadd.f32 %v1741_v55, %v1709_v50  ;;  %v1754_v58 = vpop.f32.mrf.mxu3  ;;  %2044 = vmatmul.bf16.vlgmr.msrb.gmra.mxu1 %v1775_v53 }
 0x4ad   : > { %v1755_v56 = vadd.f32 %v1754_v58, %v1710_v52  ;;  %2083 = vmatmul.bf16.vlgmr.msra.gmra.mxu0 %v1778_v54  ;;  %v1730_v59 = vpop.f32.mrf.mxu1 }
 0x4ae   : > { %v1772_v60 = vmax.f32 %v1742_v57, 0.0  ;;  %v1769_v61 = vpop.f32.mrf.mxu0 }
 0x4af   : > { %v1773_v62 = vmax.f32 %v1755_v56, 0.0 }
 0x4b0   : > { %v1776_v63 = vpack.c.bf16 %v1772_v60, %v1772_v60 }
 0x4b1   : > { %v1777_v0 = vpack.c.bf16 %v1773_v62, %v1773_v62 }
 0x4b2   : > { %2057 = vmatmul.bf16.vlgmr.msra.gmra.mxu2 %v1776_v63 }
 0x4b3   : > { %2070 = vmatmul.bf16.vlgmr.msra.gmra.mxu3 %v1777_v0  ;;  %v1743_v1 = vpop.f32.mrf.mxu2 }
 0x4b4   : > { %v1756_v2 = vpop.f32.mrf.mxu3 }
 0x529   : > { %v2045_v3 = vpop.f32.mrf.mxu1 }
 0x52a   : > { %v2084_v4 = vpop.f32.mrf.mxu0  ;;  %v2046_v8 = vadd.f32 %v2045_v3, %v1843_v5 }
 0x531   : > { %v2047_v6 = vpop.f32.mrf.mxu1 }
 0x532   : > { %v2086_v7 = vpop.f32.mrf.mxu0 }
 0x535   : > { %v2058_v9 = vpop.f32.mrf.mxu2 }
 0x536   : > { %v2059_v10 = vadd.f32 %v2058_v9, %v2046_v8  ;;  %v2071_v11 = vpop.f32.mrf.mxu3 }
 0x538   : > { %v2072_v12 = vadd.f32 %v2071_v11, %v2059_v10 }
 0x53a   : > { %v2085_v13 = vadd.f32 %v2084_v4, %v2072_v12 }
 0x53c   : > { %2089 = vst.msk [vmem:[%s378_s15] sm:$0x1] %vm2088_vm15, %v2085_v13 }
 0x53d   : > { %v2060_v14 = vpop.f32.mrf.mxu2 }
 0x53e   : > { %2946 = shalt.err (!%p2943_p3)
}
 0x53f   : > { %2875 = dma.vmem_to_hbm [thread:$0]  (%p3084_p5), %s2102_s16, 16, %s2104_s22, %s2091_s24   ;;  %v2073_v15 = vpop.f32.mrf.mxu3 }
 0x540 PF: > { %p2881_p4 = scmp.ge.s32.totalorder %s2981_s20, 2  ;;  %s2115_s13 = sand.u32 1, %s2969_s17  }
 0x541   : > { %s2116_s23 = scalar_lea.sflag [#allocation8], %s2115_s13 }
 0x542   : > { %p2878_p7 = pnand %p2881_p4, %p3088_p6 }
 0x544   : > { %p2879_p8 = pneg %p2878_p7 }
 0x546   : > { %2964 = dma.done.wait (%p2879_p8), %s2116_s23, 16  }
 0x547   : > { %2966 = vsyncadd (%p2879_p8), %s2116_s23, 4294967280  ;;  %s3696_s20 = sld [smem:[#allocation11_spill]]  ;;  %s3699_s17 = smov %s2973_s18 }
 0x548   : > { %s3697_s26 = sld [smem:[#allocation10_spill]] }
 0x549   : > { %s3698_s19 = sld [smem:[#allocation12_spill]] }
 0x54d   : > { %p21_p9 = scmp.ge.s32.totalorder %s3696_s20, 4  }
 0x54e   : > { %s3700_s18 = smov %s3697_s26 }
 0x54f   :  { %23 = sbr.rel (!%p21_p9) target bundleno = 3 (0x3), region = 103 }
 0x554   :  { %2121 = vsyncpa [#allocation8], 1 }
 0x555   :  { %2123 = vsyncpa [#allocation8 + $0x1], 1 }

</bundles_post_ra>
